<compile_context>
chip_gen: v6e
topology: v6e:2x2x1
jax: 0.10.0
libtpu: 0.0.40
codegen_flags: <defaults>
</compile_context>

<pallas_src>
import jax
import jax.numpy as jnp
from jax.experimental import pallas as pl
from jax.experimental.pallas import tpu as pltpu


def _make_kernel(T, B, I, H):
    """Builds the kernel with static shape constants closed over."""
    HH = 3 * H  # sigmoid slab width (gates pre-permuted to i, f, o, g)

    def kernel(x_ref, wih_ref, whh_ref, b_ref, wout_ref, bout_ref,
               out_ref, xp_scr):
        b = b_ref[...]            # (1, 4H) f32 (b_ih + b_hh, reordered)
        wih = wih_ref[...]        # (I, 4H) bf16 -- small (~8 vregs), reused T times

        # ---- Peeled t = 0: h0 = c0 = 0  =>  gates = x[0] @ W_ih + b ---------
        gates0 = (jnp.dot(x_ref[pl.ds(0, B), :], wih,
                          preferred_element_type=jnp.float32) + b)
        sig0 = jax.nn.sigmoid(gates0[:, :HH])          # (B, 3H): i | f | o
        g0 = jnp.tanh(gates0[:, HH:])                  # (B, H)
        c = sig0[:, 0:H] * g0                          # f * c0 == 0
        h = sig0[:, 2 * H:3 * H] * jnp.tanh(c)

        # ---- Hoisted input projection for t = 1..T-1, slab-wise stores ------
        # Per-slab writes keep the dependency frontier narrow so these matmul
        # pushes can overlap the early recurrence steps.
        for t in range(1, T):
            xp_scr[pl.ds((t - 1) * B, B), :] = (
                jnp.dot(x_ref[pl.ds(t * B, B), :], wih,
                        preferred_element_type=jnp.float32) + b)

        # ---- Recurrence: h, c carried as loop values --------------------------
        def step(t, carry):
            h, c = carry
            row = pl.multiple_of((t - 1) * B, B)
            # Re-load bf16 W_hh from VMEM each step: 3 vld/cycle hides under the
            # MXU; hoisting it would pin ~32 vregs across all unrolled steps.
            gates = (xp_scr[pl.ds(row, B), :]
                     + jnp.dot(h.astype(jnp.bfloat16), whh_ref[...],
                               preferred_element_type=jnp.float32))
            sig = jax.nn.sigmoid(gates[:, :HH])        # (B, 3H): i | f | o
            g_g = jnp.tanh(gates[:, HH:])              # (B, H)
            c_new = sig[:, H:2 * H] * c + sig[:, 0:H] * g_g
            h_new = sig[:, 2 * H:3 * H] * jnp.tanh(c_new)
            return h_new, c_new

        h_last, _ = jax.lax.fori_loop(1, T, step, (h, c), unroll=True)

        # ---- Fused classifier head (lane-dense, padded to 128 columns) -------
        out_ref[...] = (
            jnp.dot(h_last, wout_ref[...], preferred_element_type=jnp.float32)
            + bout_ref[...]).astype(out_ref.dtype)

    return kernel


def prepare_params(params):
    """One-time parameter preparation (NOT per forward call):
    gate reorder (i,f,g,o)->(i,f,o,g), transposes, bias fold, bf16 casts for
    MXU operands, lane-dense padding of the classifier head."""
    w_ih, w_hh = params["w_ih"], params["w_hh"]
    b_ih, b_hh = params["b_ih"], params["b_hh"]
    w_out, b_out = params["w_out"], params["b_out"]
    H = w_hh.shape[1]
    C = w_out.shape[0]
    C_pad = ((C + 127) // 128) * 128
    C_pad = max(C_pad, 128)

    def reorder(w):  # PyTorch rows (i, f, g, o) -> kernel rows (i, f, o, g)
        return jnp.concatenate(
            [w[0 * H:1 * H], w[1 * H:2 * H], w[3 * H:4 * H], w[2 * H:3 * H]],
            axis=0)

    wih_t = jnp.transpose(reorder(w_ih)).astype(jnp.bfloat16)      # (I, 4H)
    whh_t = jnp.transpose(reorder(w_hh)).astype(jnp.bfloat16)      # (H, 4H)
    b = reorder(b_ih + b_hh).reshape(1, 4 * H).astype(jnp.float32)  # (1, 4H)
    wout_pad = jnp.zeros((H, C_pad), jnp.float32).at[:, :C].set(
        jnp.transpose(w_out))                                       # (H, Cp)
    bout_pad = jnp.zeros((1, C_pad), jnp.float32).at[:, :C].set(b_out)

    return {"wih_t": wih_t, "whh_t": whh_t, "b": b,
            "wout_pad": wout_pad, "bout_pad": bout_pad,
            "H": int(H), "C": int(C), "C_pad": int(C_pad)}


def lstm_classifier_forward(x, prepared):
    """x: (T, B, I) float32.  prepared: output of prepare_params.
    Returns (B, classes) float32 logits."""
    T, B, I = x.shape
    H, C, C_pad = prepared["H"], prepared["C"], prepared["C_pad"]

    # Flatten time into the matmul M dimension; bf16 for the MXU.
    x2d = x.reshape(T * B, I).astype(jnp.bfloat16)

    vmem_specs = [pl.BlockSpec(memory_space=pltpu.MemorySpace.VMEM)
                  for _ in range(6)]

    out_padded = pl.pallas_call(
        _make_kernel(T, B, I, H),
        out_shape=jax.ShapeDtypeStruct((B, C_pad), jnp.float32),
        in_specs=vmem_specs,
        out_specs=pl.BlockSpec(memory_space=pltpu.MemorySpace.VMEM),
        scratch_shapes=[pltpu.VMEM((max(T - 1, 1) * B, 4 * H), jnp.float32)],
    )(x2d, prepared["wih_t"], prepared["whh_t"], prepared["b"],
      prepared["wout_pad"], prepared["bout_pad"])

    return out_padded[:, :C]


def _reference_forward(x, params):
    """Pure-JAX f32 reference matching torch.nn.LSTM + nn.Linear semantics."""
    T, B, I = x.shape
    H = params["w_hh"].shape[1]
    h = jnp.zeros((B, H), jnp.float32)
    c = jnp.zeros((B, H), jnp.float32)
    for t in range(T):
        gates = (x[t] @ params["w_ih"].T + h @ params["w_hh"].T
                 + params["b_ih"] + params["b_hh"])
        i_g = jax.nn.sigmoid(gates[:, 0 * H:1 * H])
        f_g = jax.nn.sigmoid(gates[:, 1 * H:2 * H])
        g_g = jnp.tanh(gates[:, 2 * H:3 * H])
        o_g = jax.nn.sigmoid(gates[:, 3 * H:4 * H])
        c = f_g * c + i_g * g_g
        h = o_g * jnp.tanh(c)
    return h @ params["w_out"].T + params["b_out"]


if __name__ == "__main__":
    # Shapes consistent with module defaults
    # (input_size=28, hidden_size=128, classes=10); short sequence / batch.
    T, B, I, H, C = 8, 8, 28, 128, 10

    key = jax.random.PRNGKey(0)
    ks = jax.random.split(key, 7)
    scale = 0.1
    params = {
        "w_ih":  scale * jax.random.normal(ks[0], (4 * H, I), jnp.float32),
        "w_hh":  scale * jax.random.normal(ks[1], (4 * H, H), jnp.float32),
        "b_ih":  scale * jax.random.normal(ks[2], (4 * H,), jnp.float32),
        "b_hh":  scale * jax.random.normal(ks[3], (4 * H,), jnp.float32),
        "w_out": scale * jax.random.normal(ks[4], (C, H), jnp.float32),
        "b_out": scale * jax.random.normal(ks[5], (C,), jnp.float32),
    }
    x = jax.random.normal(ks[6], (T, B, I), jnp.float32)

    prepared = prepare_params(params)            # one-time weight preparation
    logits = lstm_classifier_forward(x, prepared)
    logits = jax.block_until_ready(logits)

    ref = _reference_forward(x, params)
    assert logits.shape == (B, C)
    # Kernel uses bf16 MXU operands (f32 accumulate); compare against the f32
    # reference with a correspondingly loosened tolerance.
    assert jnp.allclose(logits, ref, atol=2e-2, rtol=2e-2), "mismatch vs reference"

    print("KERNEL_OK")
</pallas_src>

<mosaic_0001>
module attributes {stable_mosaic.version = 11 : i64} {
  func.func @kernel(%arg0: memref<64x28xbf16, #tpu.memory_space<vmem>>, %arg1: memref<28x512xbf16, #tpu.memory_space<vmem>>, %arg2: memref<128x512xbf16, #tpu.memory_space<vmem>>, %arg3: memref<1x512xf32, #tpu.memory_space<vmem>>, %arg4: memref<128x128xf32, #tpu.memory_space<vmem>>, %arg5: memref<1x128xf32, #tpu.memory_space<vmem>>, %arg6: memref<8x128xf32, #tpu.memory_space<vmem>>, %arg7: memref<56x512xf32, #tpu.memory_space<vmem>>) attributes {dimension_semantics = [], scalar_prefetch = 0 : i64, scratch_operands = 1 : i64, tpu.core_type = #tpu.core_type<tc>} {
    %c0 = arith.constant 0 : index
    %c0_0 = arith.constant 0 : index
    %0 = vector.load %arg3[%c0, %c0_0] : memref<1x512xf32, #tpu.memory_space<vmem>>, vector<1x512xf32>
    %c0_1 = arith.constant 0 : index
    %c0_2 = arith.constant 0 : index
    %1 = vector.load %arg1[%c0_1, %c0_2] : memref<28x512xbf16, #tpu.memory_space<vmem>>, vector<28x512xbf16>
    %c0_3 = arith.constant 0 : index
    %c0_4 = arith.constant 0 : index
    %2 = vector.load %arg0[%c0_3, %c0_4] : memref<64x28xbf16, #tpu.memory_space<vmem>>, vector<8x28xbf16>
    %cst = arith.constant dense<0.000000e+00> : vector<8x512xf32>
    %3 = tpu.matmul %2, %1, %cst {dimension_numbers = #tpu.dot_dimension_numbers<[1], [0], [0], [1], [0, 0, 1, 1], [], []>} : vector<8x28xbf16>, vector<28x512xbf16>, vector<8x512xf32> -> vector<8x512xf32>
    %4 = vector.broadcast %0 : vector<1x512xf32> to vector<8x512xf32>
    %5 = arith.addf %3, %4 : vector<8x512xf32>
    %6 = vector.extract_strided_slice %5 {offsets = [0, 0], sizes = [8, 384], strides = [1, 1]} : vector<8x512xf32> to vector<8x384xf32>
    %7 = arith.negf %6 : vector<8x384xf32>
    %8 = math.exp %7 : vector<8x384xf32>
    %cst_5 = arith.constant 1.000000e+00 : f32
    %9 = vector.broadcast %cst_5 : f32 to vector<8x384xf32>
    %10 = arith.addf %9, %8 : vector<8x384xf32>
    %11 = arith.divf %9, %10 : vector<8x384xf32>
    %12 = vector.extract_strided_slice %5 {offsets = [0, 384], sizes = [8, 128], strides = [1, 1]} : vector<8x512xf32> to vector<8x128xf32>
    %13 = math.tanh %12 : vector<8x128xf32>
    %14 = vector.extract_strided_slice %11 {offsets = [0, 0], sizes = [8, 128], strides = [1, 1]} : vector<8x384xf32> to vector<8x128xf32>
    %15 = arith.mulf %14, %13 : vector<8x128xf32>
    %16 = vector.extract_strided_slice %11 {offsets = [0, 256], sizes = [8, 128], strides = [1, 1]} : vector<8x384xf32> to vector<8x128xf32>
    %17 = math.tanh %15 : vector<8x128xf32>
    %18 = arith.mulf %16, %17 : vector<8x128xf32>
    %c8 = arith.constant 8 : index
    %c0_6 = arith.constant 0 : index
    %19 = vector.load %arg0[%c8, %c0_6] : memref<64x28xbf16, #tpu.memory_space<vmem>>, vector<8x28xbf16>
    %cst_7 = arith.constant dense<0.000000e+00> : vector<8x512xf32>
    %20 = tpu.matmul %19, %1, %cst_7 {dimension_numbers = #tpu.dot_dimension_numbers<[1], [0], [0], [1], [0, 0, 1, 1], [], []>} : vector<8x28xbf16>, vector<28x512xbf16>, vector<8x512xf32> -> vector<8x512xf32>
    %21 = vector.broadcast %0 : vector<1x512xf32> to vector<8x512xf32>
    %22 = arith.addf %20, %21 : vector<8x512xf32>
    %c0_8 = arith.constant 0 : index
    %c0_9 = arith.constant 0 : index
    %23 = vector.load %arg7[%c0_8, %c0_9] : memref<56x512xf32, #tpu.memory_space<vmem>>, vector<8x512xf32>
    tpu.vector_store %arg7[%c0_8, %c0_9], %22 {strides = array<i32>} : memref<56x512xf32, #tpu.memory_space<vmem>>, vector<8x512xf32>,
    %c16 = arith.constant 16 : index
    %c0_10 = arith.constant 0 : index
    %24 = vector.load %arg0[%c16, %c0_10] : memref<64x28xbf16, #tpu.memory_space<vmem>>, vector<8x28xbf16>
    %cst_11 = arith.constant dense<0.000000e+00> : vector<8x512xf32>
    %25 = tpu.matmul %24, %1, %cst_11 {dimension_numbers = #tpu.dot_dimension_numbers<[1], [0], [0], [1], [0, 0, 1, 1], [], []>} : vector<8x28xbf16>, vector<28x512xbf16>, vector<8x512xf32> -> vector<8x512xf32>
    %26 = vector.broadcast %0 : vector<1x512xf32> to vector<8x512xf32>
    %27 = arith.addf %25, %26 : vector<8x512xf32>
    %c8_12 = arith.constant 8 : index
    %c0_13 = arith.constant 0 : index
    %28 = vector.load %arg7[%c8_12, %c0_13] : memref<56x512xf32, #tpu.memory_space<vmem>>, vector<8x512xf32>
    tpu.vector_store %arg7[%c8_12, %c0_13], %27 {strides = array<i32>} : memref<56x512xf32, #tpu.memory_space<vmem>>, vector<8x512xf32>,
    %c24 = arith.constant 24 : index
    %c0_14 = arith.constant 0 : index
    %29 = vector.load %arg0[%c24, %c0_14] : memref<64x28xbf16, #tpu.memory_space<vmem>>, vector<8x28xbf16>
    %cst_15 = arith.constant dense<0.000000e+00> : vector<8x512xf32>
    %30 = tpu.matmul %29, %1, %cst_15 {dimension_numbers = #tpu.dot_dimension_numbers<[1], [0], [0], [1], [0, 0, 1, 1], [], []>} : vector<8x28xbf16>, vector<28x512xbf16>, vector<8x512xf32> -> vector<8x512xf32>
    %31 = vector.broadcast %0 : vector<1x512xf32> to vector<8x512xf32>
    %32 = arith.addf %30, %31 : vector<8x512xf32>
    %c16_16 = arith.constant 16 : index
    %c0_17 = arith.constant 0 : index
    %33 = vector.load %arg7[%c16_16, %c0_17] : memref<56x512xf32, #tpu.memory_space<vmem>>, vector<8x512xf32>
    tpu.vector_store %arg7[%c16_16, %c0_17], %32 {strides = array<i32>} : memref<56x512xf32, #tpu.memory_space<vmem>>, vector<8x512xf32>,
    %c32 = arith.constant 32 : index
    %c0_18 = arith.constant 0 : index
    %34 = vector.load %arg0[%c32, %c0_18] : memref<64x28xbf16, #tpu.memory_space<vmem>>, vector<8x28xbf16>
    %cst_19 = arith.constant dense<0.000000e+00> : vector<8x512xf32>
    %35 = tpu.matmul %34, %1, %cst_19 {dimension_numbers = #tpu.dot_dimension_numbers<[1], [0], [0], [1], [0, 0, 1, 1], [], []>} : vector<8x28xbf16>, vector<28x512xbf16>, vector<8x512xf32> -> vector<8x512xf32>
    %36 = vector.broadcast %0 : vector<1x512xf32> to vector<8x512xf32>
    %37 = arith.addf %35, %36 : vector<8x512xf32>
    %c24_20 = arith.constant 24 : index
    %c0_21 = arith.constant 0 : index
    %38 = vector.load %arg7[%c24_20, %c0_21] : memref<56x512xf32, #tpu.memory_space<vmem>>, vector<8x512xf32>
    tpu.vector_store %arg7[%c24_20, %c0_21], %37 {strides = array<i32>} : memref<56x512xf32, #tpu.memory_space<vmem>>, vector<8x512xf32>,
    %c40 = arith.constant 40 : index
    %c0_22 = arith.constant 0 : index
    %39 = vector.load %arg0[%c40, %c0_22] : memref<64x28xbf16, #tpu.memory_space<vmem>>, vector<8x28xbf16>
    %cst_23 = arith.constant dense<0.000000e+00> : vector<8x512xf32>
    %40 = tpu.matmul %39, %1, %cst_23 {dimension_numbers = #tpu.dot_dimension_numbers<[1], [0], [0], [1], [0, 0, 1, 1], [], []>} : vector<8x28xbf16>, vector<28x512xbf16>, vector<8x512xf32> -> vector<8x512xf32>
    %41 = vector.broadcast %0 : vector<1x512xf32> to vector<8x512xf32>
    %42 = arith.addf %40, %41 : vector<8x512xf32>
    %c32_24 = arith.constant 32 : index
    %c0_25 = arith.constant 0 : index
    %43 = vector.load %arg7[%c32_24, %c0_25] : memref<56x512xf32, #tpu.memory_space<vmem>>, vector<8x512xf32>
    tpu.vector_store %arg7[%c32_24, %c0_25], %42 {strides = array<i32>} : memref<56x512xf32, #tpu.memory_space<vmem>>, vector<8x512xf32>,
    %c48 = arith.constant 48 : index
    %c0_26 = arith.constant 0 : index
    %44 = vector.load %arg0[%c48, %c0_26] : memref<64x28xbf16, #tpu.memory_space<vmem>>, vector<8x28xbf16>
    %cst_27 = arith.constant dense<0.000000e+00> : vector<8x512xf32>
    %45 = tpu.matmul %44, %1, %cst_27 {dimension_numbers = #tpu.dot_dimension_numbers<[1], [0], [0], [1], [0, 0, 1, 1], [], []>} : vector<8x28xbf16>, vector<28x512xbf16>, vector<8x512xf32> -> vector<8x512xf32>
    %46 = vector.broadcast %0 : vector<1x512xf32> to vector<8x512xf32>
    %47 = arith.addf %45, %46 : vector<8x512xf32>
    %c40_28 = arith.constant 40 : index
    %c0_29 = arith.constant 0 : index
    %48 = vector.load %arg7[%c40_28, %c0_29] : memref<56x512xf32, #tpu.memory_space<vmem>>, vector<8x512xf32>
    tpu.vector_store %arg7[%c40_28, %c0_29], %47 {strides = array<i32>} : memref<56x512xf32, #tpu.memory_space<vmem>>, vector<8x512xf32>,
    %c56 = arith.constant 56 : index
    %c0_30 = arith.constant 0 : index
    %49 = vector.load %arg0[%c56, %c0_30] : memref<64x28xbf16, #tpu.memory_space<vmem>>, vector<8x28xbf16>
    %cst_31 = arith.constant dense<0.000000e+00> : vector<8x512xf32>
    %50 = tpu.matmul %49, %1, %cst_31 {dimension_numbers = #tpu.dot_dimension_numbers<[1], [0], [0], [1], [0, 0, 1, 1], [], []>} : vector<8x28xbf16>, vector<28x512xbf16>, vector<8x512xf32> -> vector<8x512xf32>
    %51 = vector.broadcast %0 : vector<1x512xf32> to vector<8x512xf32>
    %52 = arith.addf %50, %51 : vector<8x512xf32>
    %c48_32 = arith.constant 48 : index
    %c0_33 = arith.constant 0 : index
    %53 = vector.load %arg7[%c48_32, %c0_33] : memref<56x512xf32, #tpu.memory_space<vmem>>, vector<8x512xf32>
    tpu.vector_store %arg7[%c48_32, %c0_33], %52 {strides = array<i32>} : memref<56x512xf32, #tpu.memory_space<vmem>>, vector<8x512xf32>,
    %c1_i32 = arith.constant 1 : i32
    %c1_i32_34 = arith.constant 1 : i32
    %54 = arith.subi %c1_i32, %c1_i32_34 : i32
    %c8_i32 = arith.constant 8 : i32
    %55 = arith.muli %54, %c8_i32 : i32
    %56 = tpu.assume_multiple %55, 8 : i32
    %57 = arith.index_cast %56 : i32 to index
    %c0_35 = arith.constant 0 : index
    %58 = vector.load %arg7[%57, %c0_35] : memref<56x512xf32, #tpu.memory_space<vmem>>, vector<8x512xf32>
    %59 = arith.truncf %18 : vector<8x128xf32> to vector<8x128xbf16>
    %c0_36 = arith.constant 0 : index
    %c0_37 = arith.constant 0 : index
    %60 = vector.load %arg2[%c0_36, %c0_37] : memref<128x512xbf16, #tpu.memory_space<vmem>>, vector<128x512xbf16>
    %cst_38 = arith.constant dense<0.000000e+00> : vector<8x512xf32>
    %61 = tpu.matmul %59, %60, %cst_38 {dimension_numbers = #tpu.dot_dimension_numbers<[1], [0], [0], [1], [0, 0, 1, 1], [], []>} : vector<8x128xbf16>, vector<128x512xbf16>, vector<8x512xf32> -> vector<8x512xf32>
    %62 = arith.addf %58, %61 : vector<8x512xf32>
    %63 = vector.extract_strided_slice %62 {offsets = [0, 0], sizes = [8, 384], strides = [1, 1]} : vector<8x512xf32> to vector<8x384xf32>
    %64 = arith.negf %63 : vector<8x384xf32>
    %65 = math.exp %64 : vector<8x384xf32>
    %cst_39 = arith.constant 1.000000e+00 : f32
    %66 = vector.broadcast %cst_39 : f32 to vector<8x384xf32>
    %67 = arith.addf %66, %65 : vector<8x384xf32>
    %68 = arith.divf %66, %67 : vector<8x384xf32>
    %69 = vector.extract_strided_slice %62 {offsets = [0, 384], sizes = [8, 128], strides = [1, 1]} : vector<8x512xf32> to vector<8x128xf32>
    %70 = math.tanh %69 : vector<8x128xf32>
    %71 = vector.extract_strided_slice %68 {offsets = [0, 128], sizes = [8, 128], strides = [1, 1]} : vector<8x384xf32> to vector<8x128xf32>
    %72 = arith.mulf %71, %15 : vector<8x128xf32>
    %73 = vector.extract_strided_slice %68 {offsets = [0, 0], sizes = [8, 128], strides = [1, 1]} : vector<8x384xf32> to vector<8x128xf32>
    %74 = arith.mulf %73, %70 : vector<8x128xf32>
    %75 = arith.addf %72, %74 : vector<8x128xf32>
    %76 = vector.extract_strided_slice %68 {offsets = [0, 256], sizes = [8, 128], strides = [1, 1]} : vector<8x384xf32> to vector<8x128xf32>
    %77 = math.tanh %75 : vector<8x128xf32>
    %78 = arith.mulf %76, %77 : vector<8x128xf32>
    %c2_i32 = arith.constant 2 : i32
    %c1_i32_40 = arith.constant 1 : i32
    %79 = arith.subi %c2_i32, %c1_i32_40 : i32
    %c8_i32_41 = arith.constant 8 : i32
    %80 = arith.muli %79, %c8_i32_41 : i32
    %81 = tpu.assume_multiple %80, 8 : i32
    %82 = arith.index_cast %81 : i32 to index
    %c0_42 = arith.constant 0 : index
    %83 = vector.load %arg7[%82, %c0_42] : memref<56x512xf32, #tpu.memory_space<vmem>>, vector<8x512xf32>
    %84 = arith.truncf %78 : vector<8x128xf32> to vector<8x128xbf16>
    %c0_43 = arith.constant 0 : index
    %c0_44 = arith.constant 0 : index
    %85 = vector.load %arg2[%c0_43, %c0_44] : memref<128x512xbf16, #tpu.memory_space<vmem>>, vector<128x512xbf16>
    %cst_45 = arith.constant dense<0.000000e+00> : vector<8x512xf32>
    %86 = tpu.matmul %84, %85, %cst_45 {dimension_numbers = #tpu.dot_dimension_numbers<[1], [0], [0], [1], [0, 0, 1, 1], [], []>} : vector<8x128xbf16>, vector<128x512xbf16>, vector<8x512xf32> -> vector<8x512xf32>
    %87 = arith.addf %83, %86 : vector<8x512xf32>
    %88 = vector.extract_strided_slice %87 {offsets = [0, 0], sizes = [8, 384], strides = [1, 1]} : vector<8x512xf32> to vector<8x384xf32>
    %89 = arith.negf %88 : vector<8x384xf32>
    %90 = math.exp %89 : vector<8x384xf32>
    %cst_46 = arith.constant 1.000000e+00 : f32
    %91 = vector.broadcast %cst_46 : f32 to vector<8x384xf32>
    %92 = arith.addf %91, %90 : vector<8x384xf32>
    %93 = arith.divf %91, %92 : vector<8x384xf32>
    %94 = vector.extract_strided_slice %87 {offsets = [0, 384], sizes = [8, 128], strides = [1, 1]} : vector<8x512xf32> to vector<8x128xf32>
    %95 = math.tanh %94 : vector<8x128xf32>
    %96 = vector.extract_strided_slice %93 {offsets = [0, 128], sizes = [8, 128], strides = [1, 1]} : vector<8x384xf32> to vector<8x128xf32>
    %97 = arith.mulf %96, %75 : vector<8x128xf32>
    %98 = vector.extract_strided_slice %93 {offsets = [0, 0], sizes = [8, 128], strides = [1, 1]} : vector<8x384xf32> to vector<8x128xf32>
    %99 = arith.mulf %98, %95 : vector<8x128xf32>
    %100 = arith.addf %97, %99 : vector<8x128xf32>
    %101 = vector.extract_strided_slice %93 {offsets = [0, 256], sizes = [8, 128], strides = [1, 1]} : vector<8x384xf32> to vector<8x128xf32>
    %102 = math.tanh %100 : vector<8x128xf32>
    %103 = arith.mulf %101, %102 : vector<8x128xf32>
    %c3_i32 = arith.constant 3 : i32
    %c1_i32_47 = arith.constant 1 : i32
    %104 = arith.subi %c3_i32, %c1_i32_47 : i32
    %c8_i32_48 = arith.constant 8 : i32
    %105 = arith.muli %104, %c8_i32_48 : i32
    %106 = tpu.assume_multiple %105, 8 : i32
    %107 = arith.index_cast %106 : i32 to index
    %c0_49 = arith.constant 0 : index
    %108 = vector.load %arg7[%107, %c0_49] : memref<56x512xf32, #tpu.memory_space<vmem>>, vector<8x512xf32>
    %109 = arith.truncf %103 : vector<8x128xf32> to vector<8x128xbf16>
    %c0_50 = arith.constant 0 : index
    %c0_51 = arith.constant 0 : index
    %110 = vector.load %arg2[%c0_50, %c0_51] : memref<128x512xbf16, #tpu.memory_space<vmem>>, vector<128x512xbf16>
    %cst_52 = arith.constant dense<0.000000e+00> : vector<8x512xf32>
    %111 = tpu.matmul %109, %110, %cst_52 {dimension_numbers = #tpu.dot_dimension_numbers<[1], [0], [0], [1], [0, 0, 1, 1], [], []>} : vector<8x128xbf16>, vector<128x512xbf16>, vector<8x512xf32> -> vector<8x512xf32>
    %112 = arith.addf %108, %111 : vector<8x512xf32>
    %113 = vector.extract_strided_slice %112 {offsets = [0, 0], sizes = [8, 384], strides = [1, 1]} : vector<8x512xf32> to vector<8x384xf32>
    %114 = arith.negf %113 : vector<8x384xf32>
    %115 = math.exp %114 : vector<8x384xf32>
    %cst_53 = arith.constant 1.000000e+00 : f32
    %116 = vector.broadcast %cst_53 : f32 to vector<8x384xf32>
    %117 = arith.addf %116, %115 : vector<8x384xf32>
    %118 = arith.divf %116, %117 : vector<8x384xf32>
    %119 = vector.extract_strided_slice %112 {offsets = [0, 384], sizes = [8, 128], strides = [1, 1]} : vector<8x512xf32> to vector<8x128xf32>
    %120 = math.tanh %119 : vector<8x128xf32>
    %121 = vector.extract_strided_slice %118 {offsets = [0, 128], sizes = [8, 128], strides = [1, 1]} : vector<8x384xf32> to vector<8x128xf32>
    %122 = arith.mulf %121, %100 : vector<8x128xf32>
    %123 = vector.extract_strided_slice %118 {offsets = [0, 0], sizes = [8, 128], strides = [1, 1]} : vector<8x384xf32> to vector<8x128xf32>
    %124 = arith.mulf %123, %120 : vector<8x128xf32>
    %125 = arith.addf %122, %124 : vector<8x128xf32>
    %126 = vector.extract_strided_slice %118 {offsets = [0, 256], sizes = [8, 128], strides = [1, 1]} : vector<8x384xf32> to vector<8x128xf32>
    %127 = math.tanh %125 : vector<8x128xf32>
    %128 = arith.mulf %126, %127 : vector<8x128xf32>
    %c4_i32 = arith.constant 4 : i32
    %c1_i32_54 = arith.constant 1 : i32
    %129 = arith.subi %c4_i32, %c1_i32_54 : i32
    %c8_i32_55 = arith.constant 8 : i32
    %130 = arith.muli %129, %c8_i32_55 : i32
    %131 = tpu.assume_multiple %130, 8 : i32
    %132 = arith.index_cast %131 : i32 to index
    %c0_56 = arith.constant 0 : index
    %133 = vector.load %arg7[%132, %c0_56] : memref<56x512xf32, #tpu.memory_space<vmem>>, vector<8x512xf32>
    %134 = arith.truncf %128 : vector<8x128xf32> to vector<8x128xbf16>
    %c0_57 = arith.constant 0 : index
    %c0_58 = arith.constant 0 : index
    %135 = vector.load %arg2[%c0_57, %c0_58] : memref<128x512xbf16, #tpu.memory_space<vmem>>, vector<128x512xbf16>
    %cst_59 = arith.constant dense<0.000000e+00> : vector<8x512xf32>
    %136 = tpu.matmul %134, %135, %cst_59 {dimension_numbers = #tpu.dot_dimension_numbers<[1], [0], [0], [1], [0, 0, 1, 1], [], []>} : vector<8x128xbf16>, vector<128x512xbf16>, vector<8x512xf32> -> vector<8x512xf32>
    %137 = arith.addf %133, %136 : vector<8x512xf32>
    %138 = vector.extract_strided_slice %137 {offsets = [0, 0], sizes = [8, 384], strides = [1, 1]} : vector<8x512xf32> to vector<8x384xf32>
    %139 = arith.negf %138 : vector<8x384xf32>
    %140 = math.exp %139 : vector<8x384xf32>
    %cst_60 = arith.constant 1.000000e+00 : f32
    %141 = vector.broadcast %cst_60 : f32 to vector<8x384xf32>
    %142 = arith.addf %141, %140 : vector<8x384xf32>
    %143 = arith.divf %141, %142 : vector<8x384xf32>
    %144 = vector.extract_strided_slice %137 {offsets = [0, 384], sizes = [8, 128], strides = [1, 1]} : vector<8x512xf32> to vector<8x128xf32>
    %145 = math.tanh %144 : vector<8x128xf32>
    %146 = vector.extract_strided_slice %143 {offsets = [0, 128], sizes = [8, 128], strides = [1, 1]} : vector<8x384xf32> to vector<8x128xf32>
    %147 = arith.mulf %146, %125 : vector<8x128xf32>
    %148 = vector.extract_strided_slice %143 {offsets = [0, 0], sizes = [8, 128], strides = [1, 1]} : vector<8x384xf32> to vector<8x128xf32>
    %149 = arith.mulf %148, %145 : vector<8x128xf32>
    %150 = arith.addf %147, %149 : vector<8x128xf32>
    %151 = vector.extract_strided_slice %143 {offsets = [0, 256], sizes = [8, 128], strides = [1, 1]} : vector<8x384xf32> to vector<8x128xf32>
    %152 = math.tanh %150 : vector<8x128xf32>
    %153 = arith.mulf %151, %152 : vector<8x128xf32>
    %c5_i32 = arith.constant 5 : i32
    %c1_i32_61 = arith.constant 1 : i32
    %154 = arith.subi %c5_i32, %c1_i32_61 : i32
    %c8_i32_62 = arith.constant 8 : i32
    %155 = arith.muli %154, %c8_i32_62 : i32
    %156 = tpu.assume_multiple %155, 8 : i32
    %157 = arith.index_cast %156 : i32 to index
    %c0_63 = arith.constant 0 : index
    %158 = vector.load %arg7[%157, %c0_63] : memref<56x512xf32, #tpu.memory_space<vmem>>, vector<8x512xf32>
    %159 = arith.truncf %153 : vector<8x128xf32> to vector<8x128xbf16>
    %c0_64 = arith.constant 0 : index
    %c0_65 = arith.constant 0 : index
    %160 = vector.load %arg2[%c0_64, %c0_65] : memref<128x512xbf16, #tpu.memory_space<vmem>>, vector<128x512xbf16>
    %cst_66 = arith.constant dense<0.000000e+00> : vector<8x512xf32>
    %161 = tpu.matmul %159, %160, %cst_66 {dimension_numbers = #tpu.dot_dimension_numbers<[1], [0], [0], [1], [0, 0, 1, 1], [], []>} : vector<8x128xbf16>, vector<128x512xbf16>, vector<8x512xf32> -> vector<8x512xf32>
    %162 = arith.addf %158, %161 : vector<8x512xf32>
    %163 = vector.extract_strided_slice %162 {offsets = [0, 0], sizes = [8, 384], strides = [1, 1]} : vector<8x512xf32> to vector<8x384xf32>
    %164 = arith.negf %163 : vector<8x384xf32>
    %165 = math.exp %164 : vector<8x384xf32>
    %cst_67 = arith.constant 1.000000e+00 : f32
    %166 = vector.broadcast %cst_67 : f32 to vector<8x384xf32>
    %167 = arith.addf %166, %165 : vector<8x384xf32>
    %168 = arith.divf %166, %167 : vector<8x384xf32>
    %169 = vector.extract_strided_slice %162 {offsets = [0, 384], sizes = [8, 128], strides = [1, 1]} : vector<8x512xf32> to vector<8x128xf32>
    %170 = math.tanh %169 : vector<8x128xf32>
    %171 = vector.extract_strided_slice %168 {offsets = [0, 128], sizes = [8, 128], strides = [1, 1]} : vector<8x384xf32> to vector<8x128xf32>
    %172 = arith.mulf %171, %150 : vector<8x128xf32>
    %173 = vector.extract_strided_slice %168 {offsets = [0, 0], sizes = [8, 128], strides = [1, 1]} : vector<8x384xf32> to vector<8x128xf32>
    %174 = arith.mulf %173, %170 : vector<8x128xf32>
    %175 = arith.addf %172, %174 : vector<8x128xf32>
    %176 = vector.extract_strided_slice %168 {offsets = [0, 256], sizes = [8, 128], strides = [1, 1]} : vector<8x384xf32> to vector<8x128xf32>
    %177 = math.tanh %175 : vector<8x128xf32>
    %178 = arith.mulf %176, %177 : vector<8x128xf32>
    %c6_i32 = arith.constant 6 : i32
    %c1_i32_68 = arith.constant 1 : i32
    %179 = arith.subi %c6_i32, %c1_i32_68 : i32
    %c8_i32_69 = arith.constant 8 : i32
    %180 = arith.muli %179, %c8_i32_69 : i32
    %181 = tpu.assume_multiple %180, 8 : i32
    %182 = arith.index_cast %181 : i32 to index
    %c0_70 = arith.constant 0 : index
    %183 = vector.load %arg7[%182, %c0_70] : memref<56x512xf32, #tpu.memory_space<vmem>>, vector<8x512xf32>
    %184 = arith.truncf %178 : vector<8x128xf32> to vector<8x128xbf16>
    %c0_71 = arith.constant 0 : index
    %c0_72 = arith.constant 0 : index
    %185 = vector.load %arg2[%c0_71, %c0_72] : memref<128x512xbf16, #tpu.memory_space<vmem>>, vector<128x512xbf16>
    %cst_73 = arith.constant dense<0.000000e+00> : vector<8x512xf32>
    %186 = tpu.matmul %184, %185, %cst_73 {dimension_numbers = #tpu.dot_dimension_numbers<[1], [0], [0], [1], [0, 0, 1, 1], [], []>} : vector<8x128xbf16>, vector<128x512xbf16>, vector<8x512xf32> -> vector<8x512xf32>
    %187 = arith.addf %183, %186 : vector<8x512xf32>
    %188 = vector.extract_strided_slice %187 {offsets = [0, 0], sizes = [8, 384], strides = [1, 1]} : vector<8x512xf32> to vector<8x384xf32>
    %189 = arith.negf %188 : vector<8x384xf32>
    %190 = math.exp %189 : vector<8x384xf32>
    %cst_74 = arith.constant 1.000000e+00 : f32
    %191 = vector.broadcast %cst_74 : f32 to vector<8x384xf32>
    %192 = arith.addf %191, %190 : vector<8x384xf32>
    %193 = arith.divf %191, %192 : vector<8x384xf32>
    %194 = vector.extract_strided_slice %187 {offsets = [0, 384], sizes = [8, 128], strides = [1, 1]} : vector<8x512xf32> to vector<8x128xf32>
    %195 = math.tanh %194 : vector<8x128xf32>
    %196 = vector.extract_strided_slice %193 {offsets = [0, 128], sizes = [8, 128], strides = [1, 1]} : vector<8x384xf32> to vector<8x128xf32>
    %197 = arith.mulf %196, %175 : vector<8x128xf32>
    %198 = vector.extract_strided_slice %193 {offsets = [0, 0], sizes = [8, 128], strides = [1, 1]} : vector<8x384xf32> to vector<8x128xf32>
    %199 = arith.mulf %198, %195 : vector<8x128xf32>
    %200 = arith.addf %197, %199 : vector<8x128xf32>
    %201 = vector.extract_strided_slice %193 {offsets = [0, 256], sizes = [8, 128], strides = [1, 1]} : vector<8x384xf32> to vector<8x128xf32>
    %202 = math.tanh %200 : vector<8x128xf32>
    %203 = arith.mulf %201, %202 : vector<8x128xf32>
    %c7_i32 = arith.constant 7 : i32
    %c1_i32_75 = arith.constant 1 : i32
    %204 = arith.subi %c7_i32, %c1_i32_75 : i32
    %c8_i32_76 = arith.constant 8 : i32
    %205 = arith.muli %204, %c8_i32_76 : i32
    %206 = tpu.assume_multiple %205, 8 : i32
    %207 = arith.index_cast %206 : i32 to index
    %c0_77 = arith.constant 0 : index
    %208 = vector.load %arg7[%207, %c0_77] : memref<56x512xf32, #tpu.memory_space<vmem>>, vector<8x512xf32>
    %209 = arith.truncf %203 : vector<8x128xf32> to vector<8x128xbf16>
    %c0_78 = arith.constant 0 : index
    %c0_79 = arith.constant 0 : index
    %210 = vector.load %arg2[%c0_78, %c0_79] : memref<128x512xbf16, #tpu.memory_space<vmem>>, vector<128x512xbf16>
    %cst_80 = arith.constant dense<0.000000e+00> : vector<8x512xf32>
    %211 = tpu.matmul %209, %210, %cst_80 {dimension_numbers = #tpu.dot_dimension_numbers<[1], [0], [0], [1], [0, 0, 1, 1], [], []>} : vector<8x128xbf16>, vector<128x512xbf16>, vector<8x512xf32> -> vector<8x512xf32>
    %212 = arith.addf %208, %211 : vector<8x512xf32>
    %213 = vector.extract_strided_slice %212 {offsets = [0, 0], sizes = [8, 384], strides = [1, 1]} : vector<8x512xf32> to vector<8x384xf32>
    %214 = arith.negf %213 : vector<8x384xf32>
    %215 = math.exp %214 : vector<8x384xf32>
    %cst_81 = arith.constant 1.000000e+00 : f32
    %216 = vector.broadcast %cst_81 : f32 to vector<8x384xf32>
    %217 = arith.addf %216, %215 : vector<8x384xf32>
    %218 = arith.divf %216, %217 : vector<8x384xf32>
    %219 = vector.extract_strided_slice %212 {offsets = [0, 384], sizes = [8, 128], strides = [1, 1]} : vector<8x512xf32> to vector<8x128xf32>
    %220 = math.tanh %219 : vector<8x128xf32>
    %221 = vector.extract_strided_slice %218 {offsets = [0, 128], sizes = [8, 128], strides = [1, 1]} : vector<8x384xf32> to vector<8x128xf32>
    %222 = arith.mulf %221, %200 : vector<8x128xf32>
    %223 = vector.extract_strided_slice %218 {offsets = [0, 0], sizes = [8, 128], strides = [1, 1]} : vector<8x384xf32> to vector<8x128xf32>
    %224 = arith.mulf %223, %220 : vector<8x128xf32>
    %225 = arith.addf %222, %224 : vector<8x128xf32>
    %226 = vector.extract_strided_slice %218 {offsets = [0, 256], sizes = [8, 128], strides = [1, 1]} : vector<8x384xf32> to vector<8x128xf32>
    %227 = math.tanh %225 : vector<8x128xf32>
    %228 = arith.mulf %226, %227 : vector<8x128xf32>
    %c7_i32_82 = arith.constant 7 : i32
    %c0_83 = arith.constant 0 : index
    %c0_84 = arith.constant 0 : index
    %229 = vector.load %arg4[%c0_83, %c0_84] : memref<128x128xf32, #tpu.memory_space<vmem>>, vector<128x128xf32>
    %cst_85 = arith.constant dense<0.000000e+00> : vector<8x128xf32>
    %230 = tpu.matmul %228, %229, %cst_85 {dimension_numbers = #tpu.dot_dimension_numbers<[1], [0], [0], [1], [0, 0, 1, 1], [], []>} : vector<8x128xf32>, vector<128x128xf32>, vector<8x128xf32> -> vector<8x128xf32>
    %c0_86 = arith.constant 0 : index
    %c0_87 = arith.constant 0 : index
    %231 = vector.load %arg5[%c0_86, %c0_87] : memref<1x128xf32, #tpu.memory_space<vmem>>, vector<1x128xf32>
    %232 = vector.broadcast %231 : vector<1x128xf32> to vector<8x128xf32>
    %233 = arith.addf %230, %232 : vector<8x128xf32>
    %c0_88 = arith.constant 0 : index
    %c0_89 = arith.constant 0 : index
    %234 = vector.load %arg6[%c0_88, %c0_89] : memref<8x128xf32, #tpu.memory_space<vmem>>, vector<8x128xf32>
    tpu.vector_store %arg6[%c0_88, %c0_89], %233 {strides = array<i32>} : memref<8x128xf32, #tpu.memory_space<vmem>>, vector<8x128xf32>,
    return
  }
}

</mosaic_0001>

<bundles_post_ra>
// kernel: tpu_custom_call.1
= control target key start
LH: loop header
LB: loop body
LE: loop exit
PB: predicated region body
PF: predicated region fallthrough
CT: control target
= control target key end

     0   :  { %11 = vsyncpa [#allocation4], 0  ;;  %s3123_s0 = inlined_call_operand.vmem [shape: bf16[64,28], index: 0, kind: input, shape index: {}]   ;;  %s3124_s1 = inlined_call_operand.hbm [shape: bf16[28,512], index: 1, kind: input, shape index: {}]   ;;  %s3125_s2 = inlined_call_operand.hbm [shape: bf16[128,512], index: 2, kind: input, shape index: {}]   ;;  %s3126_s3 = inlined_call_operand.vmem [shape: f32[1,512], index: 3, kind: input, shape index: {}]   ;;  %s3127_s4 = inlined_call_operand.hbm [shape: f32[128,128], index: 4, kind: input, shape index: {}]   ;;  %s3128_s5 = inlined_call_operand.vmem [shape: f32[1,128], index: 5, kind: input, shape index: {}]   ;;  %s3129_s6 = inlined_call_operand.hbm [shape: f32[8,128], index: 6, kind: output, shape index: {}]  }
   0x1   :  { %12 = vsyncpa [#allocation7], 0 }
   0x2   :  { %13 = vsyncpa [#allocation5], 0  ;;  %s2472_s21 = smov [#allocation6]   ;;  %s2473_s23 = smov [#allocation3]  }
   0x3   :  { %s33_s22 = sshll.u32 %s2472_s21, 4  ;;  %s21_s24 = sshll.u32 %s2473_s23, 4  ;;  %s34_s22 = int_to_ptr.vmem [resolvable:$true] %s33_s22  ;;  %s22_s24 = int_to_ptr.vmem [resolvable:$true] %s21_s24 }
   0x4   :  { %s2394_s25 = scalar_lea.vmem %s34_s22, 4096  ;;  %p2399_p1 = scmp.lt.s32.totalorder %s34_s22, %s34_s22 }
   0x5   :  { %p2395_p0 = scmp.ne.s32.totalorder %s34_s22, %s2394_s25  ;;  %p2400_p2 = scmp.lt.s32.totalorder %s2394_s25, %s2394_s25 }
   0x7   :  { %p2401_p3 = por %p2400_p2, %p2399_p1 }
   0x9   :  { %p2402_p4 = pnand %p2401_p3, %p2395_p0 }
   0xb   :  { %2405 = shalt.err (!%p2402_p4)
}
   0xc   :  { %s2474_s26 = smov 256   ;;  %s2475_s27 = smov 16  }
   0xd   :  { %39 = dma.hbm_to_vmem [thread:$0]  %s3125_s2, 4096, %s34_s22, [#allocation7], %s2474_s26, %s2474_s26, %s2475_s27  }
   0xe   :  { %s2414_s30 = scalar_lea.vmem %s22_s24, 1024  ;;  %p2419_p6 = scmp.lt.s32.totalorder %s22_s24, %s22_s24 }
   0xf   :  { %p2415_p5 = scmp.ne.s32.totalorder %s22_s24, %s2414_s30  ;;  %p2420_p7 = scmp.lt.s32.totalorder %s2414_s30, %s2414_s30 }
  0x11   :  { %p2421_p8 = por %p2420_p7, %p2419_p6 }
  0x13   :  { %p2422_p9 = pnand %p2421_p8, %p2415_p5 }
  0x15   :  { %2425 = shalt.err (!%p2422_p9)
}
  0x16   :  { %27 = dma.hbm_to_vmem [thread:$0]  %s3124_s1, 1024, %s22_s24, [#allocation4], %s2474_s26, %s2474_s26, %s2475_s27  }
  0x17   :  { %s2476_s9 = smov [#allocation8]  }
  0x18   :  { %s47_s10 = sshll.u32 %s2476_s9, 4  ;;  %s48_s10 = int_to_ptr.vmem [resolvable:$true] %s47_s10 }
  0x19   :  { %s2434_s11 = scalar_lea.vmem %s48_s10, 2048  ;;  %p2439_p11 = scmp.lt.s32.totalorder %s48_s10, %s48_s10 }
  0x1a   :  { %p2435_p10 = scmp.ne.s32.totalorder %s48_s10, %s2434_s11  ;;  %p2440_p12 = scmp.lt.s32.totalorder %s2434_s11, %s2434_s11 }
  0x1c   :  { %p2441_p13 = por %p2440_p12, %p2439_p11 }
  0x1e   :  { %p2442_p0 = pnand %p2441_p13, %p2435_p10 }
  0x20   :  { %2445 = shalt.err (!%p2442_p0)
}
  0x21   :  { %s2477_s2 = smov 128   ;;  %s2478_s12 = smov 8  }
  0x22   :  { %53 = dma.hbm_to_vmem [thread:$0]  %s3127_s4, 2048, %s48_s10, [#allocation7], %s2477_s2, %s2477_s2, %s2478_s12  }
  0x23   :  { %2466 = dma.done.wait [#allocation4], 1024  }
  0x24   :  { %2467 = vsyncadd [#allocation4], 4294966272 }
  0x25   :  { %2468 = dma.done.wait [#allocation7], 6144  }
  0x26   :  { %2469 = vsyncadd [#allocation7], 4294961152  ;;  %v3130_v0 = vmov 0   ;;  %vm137_vm0 = vcmask 1045504   ;;  %v2533_v3 = vld [vmem:[#allocation3 + $0x4] ss:$16 sps:$4 sm:$0xff]   ;;  %v77_v51 = vlaneseq }
  0x27   :  { %182 = vmatprep.mubr.bf16.mxu1 %v3130_v0  ;;  %373 = vmatprep.mubr.bf16.mxu0 %v3130_v0  ;;  %v2529_v1 = vld [vmem:[#allocation3 + $0x24] ss:$16 sps:$4 sm:$0x3f]   ;;  %v2172_v2 = vld [vmem:[#allocation3 + $0x20] ss:$16 sps:$4 sm:$0x3f]  }
  0x28   :  { %2019 = vmatprep.subr.msk.bf16.mxu1 %vm137_vm0, %v2529_v1  ;;  %2029 = vmatprep.subr.msk.bf16.mxu0 %vm137_vm0, %v2529_v1  ;;  %v2538_v4 = vsel %vm137_vm0, %v2172_v2, 0  ;;  %v2541_v5 = vld [vmem:[#allocation3] ss:$16 sps:$4 sm:$0xff]   ;;  %v2543_v6 = vld [vmem:[#allocation3 + $0x2c] ss:$16 sps:$4 sm:$0x3f]  }
  0x29   :  { %163 = vmatpush1.bf16.msra.mxu1 %v2538_v4  ;;  %354 = vmatpush1.bf16.msra.mxu0 %v2538_v4  ;;  %v2178_v7 = vld [vmem:[#allocation3 + $0x28] ss:$16 sps:$4 sm:$0x3f]   ;;  %v75_v8 = vld [vmem:[%s3123_s0] sm:$0xf]  ;;  %vm133_vm1 = vcmask 228352  }
  0x2a   :  { %164 = vmatprep.subr.bf16.mxu1 %v2533_v3  ;;  %355 = vmatprep.subr.bf16.mxu0 %v2533_v3  ;;  %v2551_v9 = vld [vmem:[#allocation3 + $0xc] ss:$16 sps:$4 sm:$0xff]   ;;  %v337_v10 = vld [vmem:[%s3123_s0 + $0x8] sm:$0xf]  ;;  %v2561_v11 = vsel %vm137_vm0, %v2178_v7, 0  ;;  %v2781_v52 = vshrl.u32 %v77_v51, 7 }
  0x2b   :  { %v2565_v12 = vld [vmem:[#allocation3 + $0x8] ss:$16 sps:$4 sm:$0xff]   ;;  %v427_v13 = vld [vmem:[%s3123_s0 + $0xc] sm:$0xf]  ;;  %v247_v14 = vld [vmem:[%s3123_s0 + $0x4] sm:$0xf] }
  0x2c   :  { %v517_v15 = vld [vmem:[%s3123_s0 + $0x10] sm:$0xf]  ;;  %v607_v16 = vld [vmem:[%s3123_s0 + $0x14] sm:$0xf]  ;;  %v697_v17 = vld [vmem:[%s3123_s0 + $0x18] sm:$0xf] }
  0x2d   :  { %165 = vmatpush1.bf16.msra.mxu1 %v2541_v5  ;;  %356 = vmatpush1.bf16.msra.mxu0 %v2541_v5  ;;  %v787_v18 = vld [vmem:[%s3123_s0 + $0x1c] sm:$0xf]  ;;  %v2683_v19 = vld [vmem:[#allocation6 + $0xe4] ss:$16 sps:$4 sm:$0xff]   ;;  %v2687_v21 = vld [vmem:[#allocation6 + $0xe0] ss:$16 sps:$4 sm:$0xff]  }
  0x2e   :  { %2021 = vmatprep.subr.msk.bf16.mxu1 %vm137_vm0, %v2543_v6  ;;  %2033 = vmatprep.subr.msk.bf16.mxu0 %vm137_vm0, %v2529_v1  ;;  %v2685_v20 = vld [vmem:[#allocation6 + $0xec] ss:$16 sps:$4 sm:$0xff]   ;;  %v2689_v22 = vld [vmem:[#allocation6 + $0xe8] ss:$16 sps:$4 sm:$0xff]   ;;  %v2695_v23 = vld [vmem:[#allocation6 + $0xc4] ss:$16 sps:$4 sm:$0xff]  }
  0x2f   :  { %v2697_v24 = vld [vmem:[#allocation6 + $0xcc] ss:$16 sps:$4 sm:$0xff]   ;;  %v2699_v25 = vld [vmem:[#allocation6 + $0xc0] ss:$16 sps:$4 sm:$0xff]   ;;  %v2701_v26 = vld [vmem:[#allocation6 + $0xc8] ss:$16 sps:$4 sm:$0xff]  }
  0x30   :  { %2020 = vmatmul.mubr.msk.bf16.vlgmr.msra.gmra.mxu1 %vm133_vm1, %v75_v8  ;;  %2030 = vmatmul.mubr.msk.bf16.vlgmr.msra.gmra.mxu0 %vm133_vm1, %v337_v10  ;;  %v2707_v27 = vld [vmem:[#allocation6 + $0xa4] ss:$16 sps:$4 sm:$0xff]   ;;  %v2709_v28 = vld [vmem:[#allocation6 + $0xac] ss:$16 sps:$4 sm:$0xff]   ;;  %v2711_v29 = vld [vmem:[#allocation6 + $0xa0] ss:$16 sps:$4 sm:$0xff]  }
  0x31   :  { %203 = vmatpush1.bf16.msra.mxu1 %v2561_v11  ;;  %222 = vmatprep.mubr.bf16.mxu1 %v3130_v0  ;;  %v2713_v30 = vld [vmem:[#allocation6 + $0xa8] ss:$16 sps:$4 sm:$0xff]   ;;  %v2719_v31 = vld [vmem:[#allocation6 + $0x84] ss:$16 sps:$4 sm:$0xff]   ;;  %v2721_v32 = vld [vmem:[#allocation6 + $0x8c] ss:$16 sps:$4 sm:$0xff]  }
  0x32   :  { %204 = vmatprep.subr.bf16.mxu1 %v2551_v9  ;;  %444 = vmatpush1.bf16.msra.mxu0 %v2538_v4  ;;  %v2723_v33 = vld [vmem:[#allocation6 + $0x80] ss:$16 sps:$4 sm:$0xff]   ;;  %v2725_v34 = vld [vmem:[#allocation6 + $0x88] ss:$16 sps:$4 sm:$0xff]   ;;  %v2731_v35 = vld [vmem:[#allocation6 + $0x64] ss:$16 sps:$4 sm:$0xff]  }
  0x33   :  { %445 = vmatprep.subr.bf16.mxu0 %v2533_v3  ;;  %463 = vmatprep.mubr.bf16.mxu0 %v3130_v0  ;;  %v2733_v36 = vld [vmem:[#allocation6 + $0x6c] ss:$16 sps:$4 sm:$0xff]   ;;  %v2735_v37 = vld [vmem:[#allocation6 + $0x60] ss:$16 sps:$4 sm:$0xff]   ;;  %v2737_v38 = vld [vmem:[#allocation6 + $0x68] ss:$16 sps:$4 sm:$0xff]  }
  0x34   :  { %v2739_v39 = vld [vmem:[#allocation6 + $0x44] ss:$16 sps:$4 sm:$0xff]   ;;  %v2741_v40 = vld [vmem:[#allocation6 + $0x4c] ss:$16 sps:$4 sm:$0xff]   ;;  %v2747_v41 = vld [vmem:[#allocation6 + $0x40] ss:$16 sps:$4 sm:$0xff]  }
  0x35   :  { %205 = vmatpush1.bf16.msra.mxu1 %v2565_v12  ;;  %v2749_v42 = vld [vmem:[#allocation6 + $0x48] ss:$16 sps:$4 sm:$0xff]   ;;  %v2753_v43 = vld [vmem:[#allocation6 + $0x24] ss:$16 sps:$4 sm:$0xff]   ;;  %v2755_v44 = vld [vmem:[#allocation6 + $0x2c] ss:$16 sps:$4 sm:$0xff]  }
  0x36   :  { %2025 = vmatprep.subr.msk.bf16.mxu1 %vm137_vm0, %v2529_v1  ;;  %446 = vmatpush1.bf16.msra.mxu0 %v2541_v5  ;;  %v2759_v45 = vld [vmem:[#allocation6 + $0x20] ss:$16 sps:$4 sm:$0xff]   ;;  %v2761_v46 = vld [vmem:[#allocation6 + $0x28] ss:$16 sps:$4 sm:$0xff]   ;;  %v2765_v47 = vld [vmem:[#allocation6 + $0x4] ss:$16 sps:$4 sm:$0xff]  }
  0x37   :  { %2037 = vmatprep.subr.msk.bf16.mxu0 %vm137_vm0, %v2529_v1  ;;  %v2767_v48 = vld [vmem:[#allocation6 + $0xc] ss:$16 sps:$4 sm:$0xff]   ;;  %v2771_v49 = vld [vmem:[#allocation6] ss:$16 sps:$4 sm:$0xff]   ;;  %v2773_v50 = vld [vmem:[#allocation6 + $0x8] ss:$16 sps:$4 sm:$0xff]  }
  0x38   :  { %2022 = vmatmul.mubr.msk.bf16.vlgmr.msra.gmra.mxu1 %vm133_vm1, %v75_v8  ;;  %v79_v53 = vsub.s32 0, %v2781_v52  ;;  %v2787_v54 = vld [vmem:[%s3126_s3] sm:$0xf]  ;;  %v87_v59 = vsub.s32 2, %v2781_v52  ;;  %vm2481_vm2 = vmmov 0   ;;  %s2482_s7 = smov [#allocation9]  }
  0x39   :  { %264 = vmatpush1.bf16.msra.mxu1 %v2538_v4  ;;  %283 = vmatprep.mubr.bf16.mxu1 %v3130_v0  ;;  %s1995_s8 = sshll.u32 %s2482_s7, 4  ;;  %s1996_s8 = int_to_ptr.vmem [resolvable:$true] %s1995_s8 }
  0x3a   :  { %265 = vmatprep.subr.bf16.mxu1 %v2533_v3  ;;  %2034 = vmatmul.mubr.msk.bf16.vlgmr.msra.gmra.mxu0 %vm133_vm1, %v427_v13  ;;  %v2790_v55 = vrot.slane %v2787_v54, %v79_v53  ;;  %v2799_v2 = vrot.slane %v2787_v54, %v87_v59  ;;  %s2446_s9 = scalar_lea.vmem %s1996_s8, 128  ;;  %p2451_p2 = scmp.lt.s32.totalorder %s1996_s8, %s1996_s8 }
  0x3b   :  { %534 = vmatpush1.bf16.msra.mxu0 %v2538_v4  ;;  %553 = vmatprep.mubr.bf16.mxu0 %v3130_v0  ;;  %p2447_p1 = scmp.ne.s32.totalorder %s1996_s8, %s2446_s9  ;;  %p2452_p3 = scmp.lt.s32.totalorder %s2446_s9, %s2446_s9 }
  0x3c   :  { %535 = vmatprep.subr.bf16.mxu0 %v2533_v3 }
  0x3d   :  { %266 = vmatpush1.bf16.msra.mxu1 %v2541_v5  ;;  %p2453_p4 = por %p2452_p3, %p2451_p2 }
  0x3e   :  { %2027 = vmatprep.subr.msk.bf16.mxu1 %vm137_vm0, %v2543_v6 }
  0x3f   :  { %536 = vmatpush1.bf16.msra.mxu0 %v2541_v5  ;;  %p2454_p5 = pnand %p2453_p4, %p2447_p1 }
  0x40   :  { %2026 = vmatmul.mubr.msk.bf16.vlgmr.msra.gmra.mxu1 %vm133_vm1, %v247_v14  ;;  %2041 = vmatprep.subr.msk.bf16.mxu0 %vm137_vm0, %v2529_v1 }
  0x41   :  { %305 = vmatpush1.bf16.msra.mxu1 %v2561_v11  ;;  %324 = vmatprep.mubr.bf16.mxu1 %v3130_v0 }
  0x42   :  { %306 = vmatprep.subr.bf16.mxu1 %v2551_v9  ;;  %2038 = vmatmul.mubr.msk.bf16.vlgmr.msra.gmra.mxu0 %vm133_vm1, %v517_v15 }
  0x43   :  { %624 = vmatpush1.bf16.msra.mxu0 %v2538_v4  ;;  %643 = vmatprep.mubr.bf16.mxu0 %v3130_v0 }
  0x44   :  { %625 = vmatprep.subr.bf16.mxu0 %v2533_v3 }
  0x45   :  { %307 = vmatpush1.bf16.msra.mxu1 %v2565_v12 }
  0x46   :  { %2031 = vmatprep.subr.msk.bf16.mxu1 %vm137_vm0, %v2543_v6 }
  0x47   :  { %626 = vmatpush1.bf16.msra.mxu0 %v2541_v5 }
  0x48   :  { %2028 = vmatmul.mubr.msk.bf16.vlgmr.msra.gmra.mxu1 %vm133_vm1, %v247_v14  ;;  %2045 = vmatprep.subr.msk.bf16.mxu0 %vm137_vm0, %v2529_v1 }
  0x49   :  { %395 = vmatpush1.bf16.msra.mxu1 %v2561_v11  ;;  %414 = vmatprep.mubr.bf16.mxu1 %v3130_v0 }
  0x4a   :  { %396 = vmatprep.subr.bf16.mxu1 %v2551_v9  ;;  %2042 = vmatmul.mubr.msk.bf16.vlgmr.msra.gmra.mxu0 %vm133_vm1, %v607_v16 }
  0x4b   :  { %714 = vmatpush1.bf16.msra.mxu0 %v2538_v4  ;;  %733 = vmatprep.mubr.bf16.mxu0 %v3130_v0 }
  0x4c   :  { %715 = vmatprep.subr.bf16.mxu0 %v2533_v3 }
  0x4d   :  { %397 = vmatpush1.bf16.msra.mxu1 %v2565_v12 }
  0x4e   :  { %2035 = vmatprep.subr.msk.bf16.mxu1 %vm137_vm0, %v2543_v6 }
  0x4f   :  { %716 = vmatpush1.bf16.msra.mxu0 %v2541_v5 }
  0x50   :  { %2032 = vmatmul.mubr.msk.bf16.vlgmr.msra.gmra.mxu1 %vm133_vm1, %v337_v10  ;;  %2049 = vmatprep.subr.msk.bf16.mxu0 %vm137_vm0, %v2529_v1 }
  0x51   :  { %485 = vmatpush1.bf16.msra.mxu1 %v2561_v11  ;;  %504 = vmatprep.mubr.bf16.mxu1 %v3130_v0 }
  0x52   :  { %486 = vmatprep.subr.bf16.mxu1 %v2551_v9  ;;  %2046 = vmatmul.mubr.msk.bf16.vlgmr.msra.gmra.mxu0 %vm133_vm1, %v697_v17 }
  0x53   :  { %804 = vmatpush1.bf16.msra.mxu0 %v2538_v4  ;;  %823 = vmatprep.mubr.bf16.mxu0 %v3130_v0 }
  0x54   :  { %805 = vmatprep.subr.bf16.mxu0 %v2533_v3 }
  0x55   :  { %487 = vmatpush1.bf16.msra.mxu1 %v2565_v12 }
  0x56   :  { %2039 = vmatprep.subr.msk.bf16.mxu1 %vm137_vm0, %v2543_v6 }
  0x57   :  { %806 = vmatpush1.bf16.msra.mxu0 %v2541_v5 }
  0x58   :  { %2036 = vmatmul.mubr.msk.bf16.vlgmr.msra.gmra.mxu1 %vm133_vm1, %v427_v13  ;;  %1077 = vmatprep.subr.bf16.mxu0 %v2683_v19 }
  0x59   :  { %575 = vmatpush1.bf16.msra.mxu1 %v2561_v11  ;;  %594 = vmatprep.mubr.bf16.mxu1 %v3130_v0 }
  0x5a   :  { %576 = vmatprep.subr.bf16.mxu1 %v2551_v9  ;;  %2050 = vmatmul.mubr.msk.bf16.vlgmr.msra.gmra.mxu0 %vm133_vm1, %v787_v18 }
  0x5b   :  { %1109 = vmatprep.mubr.bf16.mxu0 %v3130_v0  ;;  %1078 = vmatpush1.bf16.msra.mxu0 %v2687_v21 }
  0x5c   :  { %1079 = vmatprep.subr.bf16.mxu0 %v2695_v23 }
  0x5d   :  { %577 = vmatpush1.bf16.msra.mxu1 %v2565_v12 }
  0x5e   :  { %2043 = vmatprep.subr.msk.bf16.mxu1 %vm137_vm0, %v2543_v6 }
  0x5f   :  { %1080 = vmatpush1.bf16.msra.mxu0 %v2699_v25 }
  0x60   :  { %2040 = vmatmul.mubr.msk.bf16.vlgmr.msra.gmra.mxu1 %vm133_vm1, %v517_v15  ;;  %1081 = vmatprep.subr.bf16.mxu0 %v2707_v27 }
  0x61   :  { %665 = vmatpush1.bf16.msra.mxu1 %v2561_v11  ;;  %684 = vmatprep.mubr.bf16.mxu1 %v3130_v0 }
  0x62   :  { %666 = vmatprep.subr.bf16.mxu1 %v2551_v9 }
  0x63   :  { %1082 = vmatpush1.bf16.msra.mxu0 %v2711_v29 }
  0x64   :  { %1083 = vmatprep.subr.bf16.mxu0 %v2719_v31 }
  0x65   :  { %667 = vmatpush1.bf16.msra.mxu1 %v2565_v12 }
  0x66   :  { %2047 = vmatprep.subr.msk.bf16.mxu1 %vm137_vm0, %v2543_v6 }
  0x67   :  { %1084 = vmatpush1.bf16.msra.mxu0 %v2723_v33 }
  0x68   :  { %2044 = vmatmul.mubr.msk.bf16.vlgmr.msra.gmra.mxu1 %vm133_vm1, %v607_v16  ;;  %1085 = vmatprep.subr.bf16.mxu0 %v2731_v35 }
  0x69   :  { %755 = vmatpush1.bf16.msra.mxu1 %v2561_v11  ;;  %774 = vmatprep.mubr.bf16.mxu1 %v3130_v0 }
  0x6a   :  { %756 = vmatprep.subr.bf16.mxu1 %v2551_v9 }
  0x6b   :  { %1086 = vmatpush1.bf16.msra.mxu0 %v2735_v37 }
  0x6c   :  { %1087 = vmatprep.subr.bf16.mxu0 %v2739_v39 }
  0x6d   :  { %757 = vmatpush1.bf16.msra.mxu1 %v2565_v12 }
  0x6e   :  { %2051 = vmatprep.subr.msk.bf16.mxu1 %vm137_vm0, %v2543_v6  ;;  %v91_v6 = vsub.s32 3, %v2781_v52 }
  0x6f   :  { %1088 = vmatpush1.bf16.msra.mxu0 %v2747_v41 }
  0x70   :  { %2048 = vmatmul.mubr.msk.bf16.vlgmr.msra.gmra.mxu1 %vm133_vm1, %v697_v17  ;;  %1089 = vmatprep.subr.bf16.mxu0 %v2753_v43 }
  0x71   :  { %845 = vmatpush1.bf16.msra.mxu1 %v2561_v11  ;;  %864 = vmatprep.mubr.bf16.mxu1 %v3130_v0  ;;  %v2806_v11 = vrot.slane %v2787_v54, %v91_v6 }
  0x72   :  { %846 = vmatprep.subr.bf16.mxu1 %v2551_v9 }
  0x73   :  { %1090 = vmatpush1.bf16.msra.mxu0 %v2759_v45 }
  0x74   :  { %1091 = vmatprep.subr.bf16.mxu0 %v2765_v47 }
  0x75   :  { %847 = vmatpush1.bf16.msra.mxu1 %v2565_v12 }
  0x76   :  { %1118 = vmatprep.subr.bf16.mxu1 %v2685_v20 }
  0x77   :  { %1092 = vmatpush1.bf16.msra.mxu0 %v2771_v49 }
  0x78   :  { %2052 = vmatmul.mubr.msk.bf16.vlgmr.msra.gmra.mxu1 %vm133_vm1, %v787_v18  ;;  %1195 = vmatprep.subr.bf16.mxu0 %v2683_v19 }
  0x79   :  { %1150 = vmatprep.mubr.bf16.mxu1 %v3130_v0  ;;  %1119 = vmatpush1.bf16.msra.mxu1 %v2689_v22 }
  0x7a   :  { %1120 = vmatprep.subr.bf16.mxu1 %v2697_v24 }
  0x7d   :  { %1121 = vmatpush1.bf16.msra.mxu1 %v2701_v26 }
  0x7e   :  { %1122 = vmatprep.subr.bf16.mxu1 %v2709_v28 }
  0x81   :  { %1123 = vmatpush1.bf16.msra.mxu1 %v2713_v30 }
  0x82   :  { %1124 = vmatprep.subr.bf16.mxu1 %v2721_v32 }
  0x85   :  { %1125 = vmatpush1.bf16.msra.mxu1 %v2725_v34 }
  0x86   :  { %1126 = vmatprep.subr.bf16.mxu1 %v2733_v36 }
  0x89   :  { %1127 = vmatpush1.bf16.msra.mxu1 %v2737_v38 }
  0x8a   :  { %1128 = vmatprep.subr.bf16.mxu1 %v2741_v40 }
  0x8d   :  { %1129 = vmatpush1.bf16.msra.mxu1 %v2749_v42 }
  0x8e   :  { %1130 = vmatprep.subr.bf16.mxu1 %v2755_v44 }
  0x91   :  { %1131 = vmatpush1.bf16.msra.mxu1 %v2761_v46 }
  0x92   :  { %1132 = vmatprep.subr.bf16.mxu1 %v2767_v48 }
  0x95   :  { %1133 = vmatpush1.bf16.msra.mxu1 %v2773_v50 }
  0x96   :  { %1236 = vmatprep.subr.bf16.mxu1 %v2685_v20 }
  0xf0   :  { %v184_v56 = vpop.f32.mrf.mxu1  ;;  %v2792_v57 = vpop.f32.mrf.mxu0 }
  0xf1   :  { %v185_v58 = vadd.f32 %v184_v56, %v2790_v55 }
  0xf2   :  { %v186_v60 = vpop.f32.mrf.mxu1  ;;  %v2796_v61 = vpop.f32.mrf.mxu0 }
  0xf3   :  { %v2023_v62 = vmul.f32 -1.442695, %v185_v58 }
  0xf4   :  { %v187_v63 = vpop.f32.mrf.mxu1  ;;  %v379_v1 = vpop.f32.mrf.mxu0 }
  0xf5   :  { %2230 = vpow2.f32 %v2023_v62 }
  0xf6   :  { %v188_v3 = vpop.f32.mrf.mxu1  ;;  %v380_v4 = vpop.f32.mrf.mxu0 }
  0xf8   :  { %v224_v5 = vpop.f32.mrf.mxu1 }
  0xf9   :  { %v225_v7 = vadd.f32 %v224_v5, %v2799_v2 }
  0xfa   :  { %v226_v8 = vpop.f32.mrf.mxu1  ;;  %v2803_v9 = vpop.f32.mrf.mxu0 }
  0xfb   :  { %v2024_v10 = vmul.f32 -1.442695, %v225_v7  ;;  %v227_v16 = vadd.f32 %v226_v8, %v2806_v11 }
  0xfc   :  { %v228_v12 = vpop.f32.mrf.mxu1  ;;  %v2808_v13 = vpop.f32.mrf.mxu0 }
  0xfd   :  { %3132 = vst [vmem:[#allocation13_spill] sm:$0xff] %v2808_v13  ;;  %2232 = vpow2.f32 %v2024_v10 }
  0xfe   :  { %v229_v14 = vpop.f32.mrf.mxu1  ;;  %v469_v15 = vpop.f32.mrf.mxu0  ;;  %2234 = vtanh.f32 %v227_v16 }
 0x100   :  { %v2811_v17 = vpop.f32.mrf.mxu1  ;;  %v470_v18 = vpop.f32.mrf.mxu0 }
 0x102   :  { %v2231_v51 = vpop.eup %2230  ;;  %v2813_v53 = vpop.f32.mrf.mxu1 }
 0x103   :  { %v2815_v56 = vpop.f32.mrf.mxu0  ;;  %v237_v58 = vadd.f32 1.0, %v2231_v51 }
 0x104   :  { %3133 = vst [vmem:[#allocation14_spill] sm:$0xff] %v2815_v56  ;;  %v289_v59 = vpop.f32.mrf.mxu1 }
 0x105   :  { %v2817_v60 = vpop.f32.mrf.mxu0  ;;  %2236 = vrcp.f32 %v237_v58 }
 0x106   :  { %3134 = vst [vmem:[#allocation15_spill] sm:$0xff] %v2817_v60  ;;  %v290_v62 = vpop.f32.mrf.mxu1 }
 0x107   :  { %v559_v63 = vpop.f32.mrf.mxu0 }
 0x108   :  { %v2819_v1 = vpop.f32.mrf.mxu1 }
 0x109   :  { %v560_v3 = vpop.f32.mrf.mxu0 }
 0x10a   :  { %v2821_v4 = vpop.f32.mrf.mxu1  ;;  %v2233_v5 = vpop.eup %2232 }
 0x10b   :  { %v238_v8 = vadd.f32 1.0, %v2233_v5  ;;  %v2235_v12 = vpop.eup %2234 }
 0x10c   :  { %v330_v6 = vpop.f32.mrf.mxu1 }
 0x10d   :  { %2238 = vrcp.f32 %v238_v8 }
 0x10e   :  { %v331_v7 = vpop.f32.mrf.mxu1 }
 0x110   :  { %v2823_v10 = vpop.f32.mrf.mxu1 }
 0x112   :  { %v2237_v14 = vpop.eup %2236  ;;  %v2825_v15 = vpop.f32.mrf.mxu1 }
 0x113   :  { %v2827_v16 = vmul.f32 %v2237_v14, %v2235_v12 }
 0x114   :  { %v420_v18 = vpop.f32.mrf.mxu1 }
 0x115   :  { %2240 = vtanh.f32 %v2827_v16  ;;  %v3139_v18 = vmov 0  }
 0x116   :  { %v421_v51 = vpop.f32.mrf.mxu1 }
 0x118   :  { %v2830_v58 = vpop.f32.mrf.mxu1 }
 0x119   :  { %3135 = vst [vmem:[#allocation16_spill] sm:$0xff] %v2830_v58 }
 0x11a   :  { %v2832_v59 = vpop.f32.mrf.mxu1  ;;  %v2239_v3 = vpop.eup %2238 }
 0x11b   :  { %3136 = vst [vmem:[#allocation17_spill] sm:$0xff] %v2832_v59 }
 0x11c   :  { %v510_v62 = vpop.f32.mrf.mxu1 }
 0x11e   :  { %v511_v63 = vpop.f32.mrf.mxu1 }
 0x120   :  { %v2834_v5 = vpop.f32.mrf.mxu1 }
 0x121   :  { %3137 = vst [vmem:[#allocation18_spill] sm:$0xff] %v2834_v5 }
 0x122   :  { %v2241_v6 = vpop.eup %2240  ;;  %v2836_v7 = vpop.f32.mrf.mxu1 }
 0x123   :  { %3138 = vst [vmem:[#allocation19_spill] sm:$0xff] %v2836_v7  ;;  %v246_v0 = vmul.f32 %v2241_v6, %v2239_v3 }
 0x124   :  { %v600_v8 = vpop.f32.mrf.mxu1 }
 0x125   :  { %v884_v12 = vpack.c.bf16 %v246_v0, %v246_v0  ;;  %v2852_v0 = vpop.f32.mrf.mxu0 }
 0x126   :  { %v601_v14 = vpop.f32.mrf.mxu1  ;;  %3140 = vst [vmem:[#allocation20_spill] sm:$0xff] %v2852_v0 }
 0x127   :  { %1110 = vmatmul.mubr.bf16.vlgmr.msra.gmra.mxu0 %v884_v12  ;;  %1151 = vmatmul.mubr.bf16.vlgmr.msra.gmra.mxu1 %v884_v12  ;;  %v2856_v62 = vpop.f32.mrf.mxu0 }
 0x128   :  { %1196 = vmatpush1.bf16.msra.mxu0 %v2687_v21  ;;  %1237 = vmatpush1.bf16.msra.mxu1 %v2689_v22  ;;  %v2854_v51 = vpop.f32.mrf.mxu1  ;;  %3142 = vst [vmem:[#allocation22_spill] sm:$0xff] %v2856_v62 }
 0x129   :  { %1197 = vmatprep.subr.bf16.mxu0 %v2695_v23  ;;  %1238 = vmatprep.subr.bf16.mxu1 %v2697_v24  ;;  %3141 = vst [vmem:[#allocation21_spill] sm:$0xff] %v2854_v51  ;;  %v649_v3 = vpop.f32.mrf.mxu0 }
 0x12a   :  { %1227 = vmatprep.mubr.bf16.mxu0 %v3139_v18  ;;  %1268 = vmatprep.mubr.bf16.mxu1 %v3139_v18  ;;  %v2858_v63 = vpop.f32.mrf.mxu1 }
 0x12b   :  { %3143 = vst [vmem:[#allocation23_spill] sm:$0xff] %v2858_v63  ;;  %v650_v8 = vpop.f32.mrf.mxu0 }
 0x12c   :  { %1198 = vmatpush1.bf16.msra.mxu0 %v2699_v25  ;;  %1239 = vmatpush1.bf16.msra.mxu1 %v2701_v26  ;;  %v690_v6 = vpop.f32.mrf.mxu1 }
 0x12d   :  { %1199 = vmatprep.subr.bf16.mxu0 %v2707_v27  ;;  %1240 = vmatprep.subr.bf16.mxu1 %v2709_v28  ;;  %v2868_v14 = vpop.f32.mrf.mxu0 }
 0x12e   :  { %v691_v12 = vpop.f32.mrf.mxu1  ;;  %3144 = vst [vmem:[#allocation24_spill] sm:$0xff] %v2868_v14 }
 0x12f   :  { %v2872_v51 = vpop.f32.mrf.mxu0 }
 0x130   :  { %1200 = vmatpush1.bf16.msra.mxu0 %v2711_v29  ;;  %1241 = vmatpush1.bf16.msra.mxu1 %v2713_v30  ;;  %v2870_v63 = vpop.f32.mrf.mxu1  ;;  %3146 = vst [vmem:[#allocation26_spill] sm:$0xff] %v2872_v51 }
 0x131   :  { %1201 = vmatprep.subr.bf16.mxu0 %v2719_v31  ;;  %1242 = vmatprep.subr.bf16.mxu1 %v2721_v32  ;;  %3145 = vst [vmem:[#allocation25_spill] sm:$0xff] %v2870_v63  ;;  %v739_v3 = vpop.f32.mrf.mxu0 }
 0x132   :  { %v2874_v62 = vpop.f32.mrf.mxu1 }
 0x133   :  { %3147 = vst [vmem:[#allocation27_spill] sm:$0xff] %v2874_v62  ;;  %v740_v8 = vpop.f32.mrf.mxu0 }
 0x134   :  { %1202 = vmatpush1.bf16.msra.mxu0 %v2723_v33  ;;  %1243 = vmatpush1.bf16.msra.mxu1 %v2725_v34  ;;  %v780_v6 = vpop.f32.mrf.mxu1 }
 0x135   :  { %1203 = vmatprep.subr.bf16.mxu0 %v2731_v35  ;;  %1244 = vmatprep.subr.bf16.mxu1 %v2733_v36  ;;  %v2884_v62 = vpop.f32.mrf.mxu0 }
 0x136   :  { %v781_v12 = vpop.f32.mrf.mxu1  ;;  %3148 = vst [vmem:[#allocation28_spill] sm:$0xff] %v2884_v62  ;;  %v83_v62 = vsub.s32 1, %v2781_v52 }
 0x137   :  { %v2888_v51 = vpop.f32.mrf.mxu0 }
 0x138   :  { %1204 = vmatpush1.bf16.msra.mxu0 %v2735_v37  ;;  %1245 = vmatpush1.bf16.msra.mxu1 %v2737_v38  ;;  %v2886_v63 = vpop.f32.mrf.mxu1  ;;  %3150 = vst [vmem:[#allocation30_spill] sm:$0xff] %v2888_v51  ;;  %v2900_v51 = vrot.slane %v2787_v54, %v83_v62  ;;  %v327_v54 = vadd.f32 %v2819_v1, %v2799_v2 }
 0x139   :  { %1205 = vmatprep.subr.bf16.mxu0 %v2739_v39  ;;  %1246 = vmatprep.subr.bf16.mxu1 %v2741_v40  ;;  %3149 = vst [vmem:[#allocation29_spill] sm:$0xff] %v2886_v63  ;;  %v829_v3 = vpop.f32.mrf.mxu0  ;;  %v286_v63 = vadd.f32 %v2811_v17, %v2790_v55  ;;  %v329_v62 = vadd.f32 %v2821_v4, %v2806_v11 }
 0x13a   :  { %v2890_v14 = vpop.f32.mrf.mxu1  ;;  %v288_v7 = vadd.f32 %v2813_v53, %v2900_v51 }
 0x13b   :  { %3151 = vst [vmem:[#allocation31_spill] sm:$0xff] %v2890_v14  ;;  %v830_v8 = vpop.f32.mrf.mxu0 }
 0x13c   :  { %1206 = vmatpush1.bf16.msra.mxu0 %v2747_v41  ;;  %1247 = vmatpush1.bf16.msra.mxu1 %v2749_v42  ;;  %v870_v6 = vpop.f32.mrf.mxu1 }
 0x13d   :  { %1207 = vmatprep.subr.bf16.mxu0 %v2753_v43  ;;  %1248 = vmatprep.subr.bf16.mxu1 %v2755_v44 }
 0x13e   :  { %v871_v12 = vpop.f32.mrf.mxu1 }
 0x140   :  { %1208 = vmatpush1.bf16.msra.mxu0 %v2759_v45  ;;  %1249 = vmatpush1.bf16.msra.mxu1 %v2761_v46 }
 0x141   :  { %1209 = vmatprep.subr.bf16.mxu0 %v2765_v47  ;;  %1250 = vmatprep.subr.bf16.mxu1 %v2767_v48 }
 0x144   :  { %1210 = vmatpush1.bf16.msra.mxu0 %v2771_v49  ;;  %1251 = vmatpush1.bf16.msra.mxu1 %v2773_v50 }
 0x145   :  { %1313 = vmatprep.subr.bf16.mxu0 %v2683_v19  ;;  %1354 = vmatprep.subr.bf16.mxu1 %v2685_v20 }
 0x1e7   :  { %v1111_v14 = vpop.f32.mrf.mxu0  ;;  %v1152_v0 = vpop.f32.mrf.mxu1 }
 0x1e8   :  { %v1159_v5 = vadd.f32 %v1111_v14, %v286_v63  ;;  %v1161_v17 = vadd.f32 %v1152_v0, %v327_v54 }
 0x1e9   :  { %v1113_v60 = vpop.f32.mrf.mxu0  ;;  %v1154_v56 = vpop.f32.mrf.mxu1 }
 0x1ea   :  { %v2085_v3 = vmul.f32 -1.442695, %v1159_v5  ;;  %v1160_v6 = vadd.f32 %v1113_v60, %v288_v7  ;;  %v2087_v53 = vmul.f32 -1.442695, %v1161_v17  ;;  %v1162_v63 = vadd.f32 %v1154_v56, %v329_v62 }
 0x1eb   :  { %v1115_v8 = vpop.f32.mrf.mxu0  ;;  %v1156_v12 = vpop.f32.mrf.mxu1  ;;  %v378_v17 = vadd.f32 %v2796_v61, %v2900_v51 }
 0x1ec   :  { %2242 = vpow2.f32 %v2085_v3  ;;  %v2086_v52 = vmul.f32 -1.442695, %v1160_v6 }
 0x1ed   :  { %v1116_v59 = vpop.f32.mrf.mxu0  ;;  %v1157_v58 = vpop.f32.mrf.mxu1 }
 0x1ee   :  { %2244 = vpow2.f32 %v2086_v52 }
 0x1ef   :  { %2246 = vpow2.f32 %v2087_v53 }
 0x1f0   :  { %2248 = vtanh.f32 %v1162_v63 }
 0x1f9   :  { %v2243_v14 = vpop.eup %2242 }
 0x1fa   :  { %v1172_v13 = vadd.f32 1.0, %v2243_v14 }
 0x1fb   :  { %v2245_v60 = vpop.eup %2244 }
 0x1fc   :  { %2250 = vrcp.f32 %v1172_v13  ;;  %v1173_v5 = vadd.f32 1.0, %v2245_v60  ;;  %v2247_v59 = vpop.eup %2246  ;;  %v376_v13 = vadd.f32 %v2792_v57, %v2790_v55  ;;  %v417_v57 = vadd.f32 %v2823_v10, %v2799_v2 }
 0x1fd   :  { %v2249_v58 = vpop.eup %2248  ;;  %v1174_v1 = vadd.f32 1.0, %v2247_v59 }
 0x1fe   :  { %2252 = vrcp.f32 %v1173_v5 }
 0x1ff   :  { %2254 = vrcp.f32 %v1174_v1  ;;  %v419_v1 = vadd.f32 %v2825_v15, %v2806_v11 }
 0x209   :  { %v2251_v7 = vpop.eup %2250 }
 0x20a   :  { %v1183_v3 = vmul.f32 %v2251_v7, %v2249_v58 }
 0x20b   :  { %v2253_v6 = vpop.eup %2252 }
 0x20c   :  { %v1182_v0 = vmul.f32 %v2253_v6, %v2827_v16  ;;  %v2255_v56 = vpop.eup %2254 }
 0x20e   :  { %v2909_v8 = vadd.f32 %v1183_v3, %v1182_v0 }
 0x210   :  { %2256 = vtanh.f32 %v2909_v8 }
 0x21d   :  { %v2257_v4 = vpop.eup %2256 }
 0x21e   :  { %v1186_v12 = vmul.f32 %v2257_v4, %v2255_v56 }
 0x220   :  { %v1194_v52 = vpack.c.bf16 %v1186_v12, %v1186_v12 }
 0x222   :  { %1228 = vmatmul.mubr.bf16.vlgmr.msra.gmra.mxu0 %v1194_v52  ;;  %1269 = vmatmul.mubr.bf16.vlgmr.msra.gmra.mxu1 %v1194_v52 }
 0x223   :  { %1314 = vmatpush1.bf16.msra.mxu0 %v2687_v21  ;;  %1355 = vmatpush1.bf16.msra.mxu1 %v2689_v22 }
 0x224   :  { %1315 = vmatprep.subr.bf16.mxu0 %v2695_v23  ;;  %1356 = vmatprep.subr.bf16.mxu1 %v2697_v24 }
 0x225   :  { %1345 = vmatprep.mubr.bf16.mxu0 %v3139_v18  ;;  %1386 = vmatprep.mubr.bf16.mxu1 %v3139_v18 }
 0x227   :  { %1316 = vmatpush1.bf16.msra.mxu0 %v2699_v25  ;;  %1357 = vmatpush1.bf16.msra.mxu1 %v2701_v26 }
 0x228   :  { %1317 = vmatprep.subr.bf16.mxu0 %v2707_v27  ;;  %1358 = vmatprep.subr.bf16.mxu1 %v2709_v28 }
 0x22b   :  { %1318 = vmatpush1.bf16.msra.mxu0 %v2711_v29  ;;  %1359 = vmatpush1.bf16.msra.mxu1 %v2713_v30 }
 0x22c   :  { %1319 = vmatprep.subr.bf16.mxu0 %v2719_v31  ;;  %1360 = vmatprep.subr.bf16.mxu1 %v2721_v32 }
 0x22f   :  { %1320 = vmatpush1.bf16.msra.mxu0 %v2723_v33  ;;  %1361 = vmatpush1.bf16.msra.mxu1 %v2725_v34 }
 0x230   :  { %1321 = vmatprep.subr.bf16.mxu0 %v2731_v35  ;;  %1362 = vmatprep.subr.bf16.mxu1 %v2733_v36 }
 0x233   :  { %1322 = vmatpush1.bf16.msra.mxu0 %v2735_v37  ;;  %1363 = vmatpush1.bf16.msra.mxu1 %v2737_v38 }
 0x234   :  { %1323 = vmatprep.subr.bf16.mxu0 %v2739_v39  ;;  %1364 = vmatprep.subr.bf16.mxu1 %v2741_v40 }
 0x237   :  { %1324 = vmatpush1.bf16.msra.mxu0 %v2747_v41  ;;  %1365 = vmatpush1.bf16.msra.mxu1 %v2749_v42 }
 0x238   :  { %1325 = vmatprep.subr.bf16.mxu0 %v2753_v43  ;;  %1366 = vmatprep.subr.bf16.mxu1 %v2755_v44 }
 0x23b   :  { %1326 = vmatpush1.bf16.msra.mxu0 %v2759_v45  ;;  %1367 = vmatpush1.bf16.msra.mxu1 %v2761_v46 }
 0x23c   :  { %1327 = vmatprep.subr.bf16.mxu0 %v2765_v47  ;;  %1368 = vmatprep.subr.bf16.mxu1 %v2767_v48 }
 0x23f   :  { %1328 = vmatpush1.bf16.msra.mxu0 %v2771_v49  ;;  %1369 = vmatpush1.bf16.msra.mxu1 %v2773_v50 }
 0x240   :  { %1431 = vmatprep.subr.bf16.mxu0 %v2683_v19  ;;  %1472 = vmatprep.subr.bf16.mxu1 %v2685_v20 }
 0x2e2   :  { %v1229_v16 = vpop.f32.mrf.mxu0  ;;  %v1270_v54 = vpop.f32.mrf.mxu1 }
 0x2e3   :  { %v1277_v62 = vadd.f32 %v1229_v16, %v376_v13  ;;  %v1279_v6 = vadd.f32 %v1270_v54, %v417_v57 }
 0x2e4   :  { %v1231_v53 = vpop.f32.mrf.mxu0  ;;  %v1272_v63 = vpop.f32.mrf.mxu1 }
 0x2e5   :  { %v2088_v14 = vmul.f32 -1.442695, %v1277_v62  ;;  %v1278_v60 = vadd.f32 %v1231_v53, %v378_v17  ;;  %v2090_v61 = vmul.f32 -1.442695, %v1279_v6  ;;  %v1280_v0 = vadd.f32 %v1272_v63, %v419_v1 }
 0x2e6   :  { %v1233_v5 = vpop.f32.mrf.mxu0  ;;  %v1274_v59 = vpop.f32.mrf.mxu1 }
 0x2e7   :  { %2258 = vpow2.f32 %v2088_v14  ;;  %v2089_v58 = vmul.f32 -1.442695, %v1278_v60 }
 0x2e8   :  { %v1234_v7 = vpop.f32.mrf.mxu0  ;;  %v1275_v3 = vpop.f32.mrf.mxu1 }
 0x2e9   :  { %2260 = vpow2.f32 %v2089_v58  ;;  %v3152_v7 = vld [vmem:[#allocation13_spill] sm:$0xff] }
 0x2ea   :  { %2262 = vpow2.f32 %v2090_v61  ;;  %v468_v3 = vadd.f32 %v3152_v7, %v2900_v51 }
 0x2eb   :  { %2264 = vtanh.f32 %v1280_v0 }
 0x2f4   :  { %v2259_v56 = vpop.eup %2258 }
 0x2f5   :  { %v1290_v4 = vadd.f32 1.0, %v2259_v56 }
 0x2f6   :  { %v2261_v12 = vpop.eup %2260 }
 0x2f7   :  { %2266 = vrcp.f32 %v1290_v4  ;;  %v1291_v52 = vadd.f32 1.0, %v2261_v12  ;;  %v2263_v13 = vpop.eup %2262 }
 0x2f8   :  { %v2265_v16 = vpop.eup %2264  ;;  %v1292_v10 = vadd.f32 1.0, %v2263_v13 }
 0x2f9   :  { %2268 = vrcp.f32 %v1291_v52 }
 0x2fa   :  { %2270 = vrcp.f32 %v1292_v10 }
 0x304   :  { %v2267_v17 = vpop.eup %2266 }
 0x305   :  { %v1301_v62 = vmul.f32 %v2267_v17, %v2265_v16  ;;  %v3153_v16 = vld [vmem:[#allocation16_spill] sm:$0xff] }
 0x306   :  { %v2269_v53 = vpop.eup %2268 }
 0x307   :  { %v1300_v54 = vmul.f32 %v2269_v53, %v2909_v8  ;;  %v2271_v15 = vpop.eup %2270  ;;  %v466_v8 = vadd.f32 %v2803_v9, %v2790_v55  ;;  %v507_v9 = vadd.f32 %v3153_v16, %v2799_v2  ;;  %v3156_v16 = vld [vmem:[#allocation15_spill] sm:$0xff] }
 0x309   :  { %v2955_v14 = vadd.f32 %v1301_v62, %v1300_v54  ;;  %v3154_v62 = vld [vmem:[#allocation17_spill] sm:$0xff] }
 0x30a   :  { %v509_v53 = vadd.f32 %v3154_v62, %v2806_v11 }
 0x30b   :  { %2272 = vtanh.f32 %v2955_v14 }
 0x318   :  { %v2273_v63 = vpop.eup %2272 }
 0x319   :  { %v1304_v60 = vmul.f32 %v2273_v63, %v2271_v15 }
 0x31b   :  { %v1312_v5 = vpack.c.bf16 %v1304_v60, %v1304_v60 }
 0x31d   :  { %1346 = vmatmul.mubr.bf16.vlgmr.msra.gmra.mxu0 %v1312_v5  ;;  %1387 = vmatmul.mubr.bf16.vlgmr.msra.gmra.mxu1 %v1312_v5 }
 0x31e   :  { %1432 = vmatpush1.bf16.msra.mxu0 %v2687_v21  ;;  %1473 = vmatpush1.bf16.msra.mxu1 %v2689_v22 }
 0x31f   :  { %1433 = vmatprep.subr.bf16.mxu0 %v2695_v23  ;;  %1474 = vmatprep.subr.bf16.mxu1 %v2697_v24 }
 0x320   :  { %1463 = vmatprep.mubr.bf16.mxu0 %v3139_v18  ;;  %1504 = vmatprep.mubr.bf16.mxu1 %v3139_v18 }
 0x322   :  { %1434 = vmatpush1.bf16.msra.mxu0 %v2699_v25  ;;  %1475 = vmatpush1.bf16.msra.mxu1 %v2701_v26 }
 0x323   :  { %1435 = vmatprep.subr.bf16.mxu0 %v2707_v27  ;;  %1476 = vmatprep.subr.bf16.mxu1 %v2709_v28 }
 0x326   :  { %1436 = vmatpush1.bf16.msra.mxu0 %v2711_v29  ;;  %1477 = vmatpush1.bf16.msra.mxu1 %v2713_v30 }
 0x327   :  { %1437 = vmatprep.subr.bf16.mxu0 %v2719_v31  ;;  %1478 = vmatprep.subr.bf16.mxu1 %v2721_v32 }
 0x32a   :  { %1438 = vmatpush1.bf16.msra.mxu0 %v2723_v33  ;;  %1479 = vmatpush1.bf16.msra.mxu1 %v2725_v34 }
 0x32b   :  { %1439 = vmatprep.subr.bf16.mxu0 %v2731_v35  ;;  %1480 = vmatprep.subr.bf16.mxu1 %v2733_v36 }
 0x32e   :  { %1440 = vmatpush1.bf16.msra.mxu0 %v2735_v37  ;;  %1481 = vmatpush1.bf16.msra.mxu1 %v2737_v38 }
 0x32f   :  { %1441 = vmatprep.subr.bf16.mxu0 %v2739_v39  ;;  %1482 = vmatprep.subr.bf16.mxu1 %v2741_v40 }
 0x332   :  { %1442 = vmatpush1.bf16.msra.mxu0 %v2747_v41  ;;  %1483 = vmatpush1.bf16.msra.mxu1 %v2749_v42 }
 0x333   :  { %1443 = vmatprep.subr.bf16.mxu0 %v2753_v43  ;;  %1484 = vmatprep.subr.bf16.mxu1 %v2755_v44 }
 0x336   :  { %1444 = vmatpush1.bf16.msra.mxu0 %v2759_v45  ;;  %1485 = vmatpush1.bf16.msra.mxu1 %v2761_v46 }
 0x337   :  { %1445 = vmatprep.subr.bf16.mxu0 %v2765_v47  ;;  %1486 = vmatprep.subr.bf16.mxu1 %v2767_v48 }
 0x33a   :  { %1446 = vmatpush1.bf16.msra.mxu0 %v2771_v49  ;;  %1487 = vmatpush1.bf16.msra.mxu1 %v2773_v50 }
 0x33b   :  { %1549 = vmatprep.subr.bf16.mxu0 %v2683_v19  ;;  %1590 = vmatprep.subr.bf16.mxu1 %v2685_v20 }
 0x3dd   :  { %v1347_v59 = vpop.f32.mrf.mxu0  ;;  %v1388_v58 = vpop.f32.mrf.mxu1 }
 0x3de   :  { %v1395_v57 = vadd.f32 %v1347_v59, %v466_v8  ;;  %v1397_v17 = vadd.f32 %v1388_v58, %v507_v9  ;;  %v558_v9 = vadd.f32 %v3156_v16, %v2900_v51 }
 0x3df   :  { %v1349_v6 = vpop.f32.mrf.mxu0  ;;  %v1390_v1 = vpop.f32.mrf.mxu1 }
 0x3e0   :  { %v2091_v61 = vmul.f32 -1.442695, %v1395_v57  ;;  %v1396_v0 = vadd.f32 %v1349_v6, %v468_v3  ;;  %v2093_v10 = vmul.f32 -1.442695, %v1397_v17  ;;  %v1398_v54 = vadd.f32 %v1390_v1, %v509_v53 }
 0x3e1   :  { %v1351_v56 = vpop.f32.mrf.mxu0  ;;  %v1392_v4 = vpop.f32.mrf.mxu1 }
 0x3e2   :  { %2274 = vpow2.f32 %v2091_v61  ;;  %v2092_v12 = vmul.f32 -1.442695, %v1396_v0 }
 0x3e3   :  { %v1352_v52 = vpop.f32.mrf.mxu0  ;;  %v1393_v13 = vpop.f32.mrf.mxu1 }
 0x3e4   :  { %2276 = vpow2.f32 %v2092_v12 }
 0x3e5   :  { %2278 = vpow2.f32 %v2093_v10 }
 0x3e6   :  { %2280 = vtanh.f32 %v1398_v54 }
 0x3ef   :  { %v2275_v15 = vpop.eup %2274 }
 0x3f0   :  { %v1408_v63 = vadd.f32 1.0, %v2275_v15 }
 0x3f1   :  { %v2277_v60 = vpop.eup %2276 }
 0x3f2   :  { %2282 = vrcp.f32 %v1408_v63  ;;  %v1409_v5 = vadd.f32 1.0, %v2277_v60  ;;  %v2279_v8 = vpop.eup %2278 }
 0x3f3   :  { %v2281_v59 = vpop.eup %2280  ;;  %v1410_v6 = vadd.f32 1.0, %v2279_v8 }
 0x3f4   :  { %2284 = vrcp.f32 %v1409_v5 }
 0x3f5   :  { %2286 = vrcp.f32 %v1410_v6 }
 0x3ff   :  { %v2283_v7 = vpop.eup %2282 }
 0x400   :  { %v1419_v3 = vmul.f32 %v2283_v7, %v2281_v59  ;;  %v3158_v7 = vld [vmem:[#allocation19_spill] sm:$0xff] }
 0x401   :  { %v2285_v57 = vpop.eup %2284 }
 0x402   :  { %v1418_v58 = vmul.f32 %v2285_v57, %v2955_v14  ;;  %v2287_v1 = vpop.eup %2286  ;;  %v3155_v14 = vld [vmem:[#allocation14_spill] sm:$0xff] }
 0x403   :  { %v556_v12 = vadd.f32 %v3155_v14, %v2790_v55 }
 0x404   :  { %v3001_v61 = vadd.f32 %v1419_v3, %v1418_v58  ;;  %v599_v3 = vadd.f32 %v3158_v7, %v2806_v11 }
 0x406   :  { %2288 = vtanh.f32 %v3001_v61 }
 0x413   :  { %v2289_v0 = vpop.eup %2288 }
 0x414   :  { %v1422_v56 = vmul.f32 %v2289_v0, %v2287_v1 }
 0x416   :  { %v1430_v4 = vpack.c.bf16 %v1422_v56, %v1422_v56 }
 0x418   :  { %1464 = vmatmul.mubr.bf16.vlgmr.msra.gmra.mxu0 %v1430_v4  ;;  %1505 = vmatmul.mubr.bf16.vlgmr.msra.gmra.mxu1 %v1430_v4 }
 0x419   :  { %1550 = vmatpush1.bf16.msra.mxu0 %v2687_v21  ;;  %1591 = vmatpush1.bf16.msra.mxu1 %v2689_v22 }
 0x41a   :  { %1551 = vmatprep.subr.bf16.mxu0 %v2695_v23  ;;  %1592 = vmatprep.subr.bf16.mxu1 %v2697_v24 }
 0x41b   :  { %1581 = vmatprep.mubr.bf16.mxu0 %v3139_v18  ;;  %1622 = vmatprep.mubr.bf16.mxu1 %v3139_v18 }
 0x41d   :  { %1552 = vmatpush1.bf16.msra.mxu0 %v2699_v25  ;;  %1593 = vmatpush1.bf16.msra.mxu1 %v2701_v26 }
 0x41e   :  { %1553 = vmatprep.subr.bf16.mxu0 %v2707_v27  ;;  %1594 = vmatprep.subr.bf16.mxu1 %v2709_v28 }
 0x421   :  { %1554 = vmatpush1.bf16.msra.mxu0 %v2711_v29  ;;  %1595 = vmatpush1.bf16.msra.mxu1 %v2713_v30 }
 0x422   :  { %1555 = vmatprep.subr.bf16.mxu0 %v2719_v31  ;;  %1596 = vmatprep.subr.bf16.mxu1 %v2721_v32 }
 0x425   :  { %1556 = vmatpush1.bf16.msra.mxu0 %v2723_v33  ;;  %1597 = vmatpush1.bf16.msra.mxu1 %v2725_v34 }
 0x426   :  { %1557 = vmatprep.subr.bf16.mxu0 %v2731_v35  ;;  %1598 = vmatprep.subr.bf16.mxu1 %v2733_v36 }
 0x429   :  { %1558 = vmatpush1.bf16.msra.mxu0 %v2735_v37  ;;  %1599 = vmatpush1.bf16.msra.mxu1 %v2737_v38 }
 0x42a   :  { %1559 = vmatprep.subr.bf16.mxu0 %v2739_v39  ;;  %1600 = vmatprep.subr.bf16.mxu1 %v2741_v40 }
 0x42d   :  { %1560 = vmatpush1.bf16.msra.mxu0 %v2747_v41  ;;  %1601 = vmatpush1.bf16.msra.mxu1 %v2749_v42 }
 0x42e   :  { %1561 = vmatprep.subr.bf16.mxu0 %v2753_v43  ;;  %1602 = vmatprep.subr.bf16.mxu1 %v2755_v44 }
 0x431   :  { %1562 = vmatpush1.bf16.msra.mxu0 %v2759_v45  ;;  %1603 = vmatpush1.bf16.msra.mxu1 %v2761_v46 }
 0x432   :  { %1563 = vmatprep.subr.bf16.mxu0 %v2765_v47  ;;  %1604 = vmatprep.subr.bf16.mxu1 %v2767_v48 }
 0x435   :  { %1564 = vmatpush1.bf16.msra.mxu0 %v2771_v49  ;;  %1605 = vmatpush1.bf16.msra.mxu1 %v2773_v50 }
 0x436   :  { %1667 = vmatprep.subr.bf16.mxu0 %v2683_v19  ;;  %1708 = vmatprep.subr.bf16.mxu1 %v2685_v20  ;;  %v3157_v20 = vld [vmem:[#allocation18_spill] sm:$0xff] }
 0x437   :  { %v597_v8 = vadd.f32 %v3157_v20, %v2799_v2 }
 0x4d8   :  { %v1465_v52 = vpop.f32.mrf.mxu0  ;;  %v1506_v13 = vpop.f32.mrf.mxu1 }
 0x4d9   :  { %v1513_v17 = vadd.f32 %v1465_v52, %v556_v12  ;;  %v1515_v59 = vadd.f32 %v1506_v13, %v597_v8 }
 0x4da   :  { %v1467_v62 = vpop.f32.mrf.mxu0  ;;  %v1508_v53 = vpop.f32.mrf.mxu1 }
 0x4db   :  { %v2094_v10 = vmul.f32 -1.442695, %v1513_v17  ;;  %v1514_v54 = vadd.f32 %v1467_v62, %v558_v9  ;;  %v2096_v57 = vmul.f32 -1.442695, %v1515_v59  ;;  %v1516_v6 = vadd.f32 %v1508_v53, %v599_v3 }
 0x4dc   :  { %v1469_v15 = vpop.f32.mrf.mxu0  ;;  %v1510_v63 = vpop.f32.mrf.mxu1 }
 0x4dd   :  { %2290 = vpow2.f32 %v2094_v10  ;;  %v2095_v60 = vmul.f32 -1.442695, %v1514_v54 }
 0x4de   :  { %v1470_v19 = vpop.f32.mrf.mxu0  ;;  %v1511_v5 = vpop.f32.mrf.mxu1 }
 0x4df   :  { %2292 = vpow2.f32 %v2095_v60 }
 0x4e0   :  { %2294 = vpow2.f32 %v2096_v57  ;;  %v2356_v57 = vld [vmem:[#allocation6 + $0xe0] ss:$16 sps:$4 sm:$0xff]  }
 0x4e1   :  { %2296 = vtanh.f32 %v1516_v6  ;;  %v2357_v6 = vld [vmem:[#allocation6 + $0xe8] ss:$16 sps:$4 sm:$0xff]  }
 0x4ea   :  { %v2291_v58 = vpop.eup %2290 }
 0x4eb   :  { %v1526_v1 = vadd.f32 1.0, %v2291_v58  ;;  %v2358_v58 = vld [vmem:[#allocation6 + $0xc4] ss:$16 sps:$4 sm:$0xff]  }
 0x4ec   :  { %v2293_v0 = vpop.eup %2292 }
 0x4ed   :  { %2298 = vrcp.f32 %v1526_v1  ;;  %v1527_v56 = vadd.f32 1.0, %v2293_v0  ;;  %v2295_v4 = vpop.eup %2294  ;;  %v2359_v1 = vld [vmem:[#allocation6 + $0xcc] ss:$16 sps:$4 sm:$0xff]   ;;  %v2360_v0 = vld [vmem:[#allocation6 + $0xc0] ss:$16 sps:$4 sm:$0xff]  }
 0x4ee   :  { %v2297_v14 = vpop.eup %2296  ;;  %v1528_v9 = vadd.f32 1.0, %v2295_v4  ;;  %v2362_v4 = vld [vmem:[#allocation6 + $0xa4] ss:$16 sps:$4 sm:$0xff]  }
 0x4ef   :  { %2300 = vrcp.f32 %v1527_v56  ;;  %v2361_v56 = vld [vmem:[#allocation6 + $0xc8] ss:$16 sps:$4 sm:$0xff]  }
 0x4f0   :  { %2302 = vrcp.f32 %v1528_v9  ;;  %v2367_v9 = vld [vmem:[#allocation6 + $0x8c] ss:$16 sps:$4 sm:$0xff]  }
 0x4fa   :  { %v2299_v12 = vpop.eup %2298 }
 0x4fb   :  { %v1537_v52 = vmul.f32 %v2299_v12, %v2297_v14  ;;  %v2363_v14 = vld [vmem:[#allocation6 + $0xac] ss:$16 sps:$4 sm:$0xff]   ;;  %v2364_v12 = vld [vmem:[#allocation6 + $0xa0] ss:$16 sps:$4 sm:$0xff]  }
 0x4fc   :  { %v2301_v16 = vpop.eup %2300 }
 0x4fd   :  { %v1536_v13 = vmul.f32 %v2301_v16, %v3001_v61  ;;  %v2303_v62 = vpop.eup %2302  ;;  %v2366_v16 = vld [vmem:[#allocation6 + $0x84] ss:$16 sps:$4 sm:$0xff]  }
 0x4ff   :  { %v3047_v17 = vadd.f32 %v1537_v52, %v1536_v13  ;;  %v2365_v52 = vld [vmem:[#allocation6 + $0xa8] ss:$16 sps:$4 sm:$0xff]   ;;  %v2368_v13 = vld [vmem:[#allocation6 + $0x80] ss:$16 sps:$4 sm:$0xff]  }
 0x501   :  { %2304 = vtanh.f32 %v3047_v17 }
 0x50e   :  { %v2305_v53 = vpop.eup %2304 }
 0x50f   :  { %v1540_v10 = vmul.f32 %v2305_v53, %v2303_v62  ;;  %v2371_v62 = vld [vmem:[#allocation6 + $0x6c] ss:$16 sps:$4 sm:$0xff]   ;;  %v2372_v53 = vld [vmem:[#allocation6 + $0x60] ss:$16 sps:$4 sm:$0xff]  }
 0x511   :  { %v1548_v54 = vpack.c.bf16 %v1540_v10, %v1540_v10  ;;  %v2373_v10 = vld [vmem:[#allocation6 + $0x68] ss:$16 sps:$4 sm:$0xff]  }
 0x513   :  { %1582 = vmatmul.mubr.bf16.vlgmr.msra.gmra.mxu0 %v1548_v54  ;;  %1623 = vmatmul.mubr.bf16.vlgmr.msra.gmra.mxu1 %v1548_v54  ;;  %v2374_v54 = vld [vmem:[#allocation6 + $0x44] ss:$16 sps:$4 sm:$0xff]  }
 0x514   :  { %1668 = vmatpush1.bf16.msra.mxu0 %v2687_v21  ;;  %1709 = vmatpush1.bf16.msra.mxu1 %v2689_v22  ;;  %v2354_v21 = vld [vmem:[#allocation6 + $0xe4] ss:$16 sps:$4 sm:$0xff]   ;;  %v2355_v22 = vld [vmem:[#allocation6 + $0xec] ss:$16 sps:$4 sm:$0xff]  }
 0x515   :  { %1669 = vmatprep.subr.bf16.mxu0 %v2695_v23  ;;  %1710 = vmatprep.subr.bf16.mxu1 %v2697_v24  ;;  %v3159_v23 = vld [vmem:[#allocation20_spill] sm:$0xff] }
 0x516   :  { %1699 = vmatprep.mubr.bf16.mxu0 %v3139_v18  ;;  %1740 = vmatprep.mubr.bf16.mxu1 %v3139_v18  ;;  %v646_v24 = vadd.f32 %v3159_v23, %v2790_v55  ;;  %v2377_v23 = vld [vmem:[#allocation6 + $0x48] ss:$16 sps:$4 sm:$0xff]  }
 0x518   :  { %1670 = vmatpush1.bf16.msra.mxu0 %v2699_v25  ;;  %1711 = vmatpush1.bf16.msra.mxu1 %v2701_v26 }
 0x519   :  { %1671 = vmatprep.subr.bf16.mxu0 %v2707_v27  ;;  %1712 = vmatprep.subr.bf16.mxu1 %v2709_v28  ;;  %v3160_v27 = vld [vmem:[#allocation22_spill] sm:$0xff] }
 0x51a   :  { %v648_v28 = vadd.f32 %v3160_v27, %v2900_v51  ;;  %v2381_v27 = vld [vmem:[#allocation6 + $0x28] ss:$16 sps:$4 sm:$0xff]  }
 0x51c   :  { %1672 = vmatpush1.bf16.msra.mxu0 %v2711_v29  ;;  %1713 = vmatpush1.bf16.msra.mxu1 %v2713_v30 }
 0x51d   :  { %1673 = vmatprep.subr.bf16.mxu0 %v2719_v31  ;;  %1714 = vmatprep.subr.bf16.mxu1 %v2721_v32 }
 0x520   :  { %1674 = vmatpush1.bf16.msra.mxu0 %v2723_v33  ;;  %1715 = vmatpush1.bf16.msra.mxu1 %v2725_v34 }
 0x521   :  { %1675 = vmatprep.subr.bf16.mxu0 %v2731_v35  ;;  %1716 = vmatprep.subr.bf16.mxu1 %v2733_v36 }
 0x524   :  { %1676 = vmatpush1.bf16.msra.mxu0 %v2735_v37  ;;  %1717 = vmatpush1.bf16.msra.mxu1 %v2737_v38 }
 0x525   :  { %1677 = vmatprep.subr.bf16.mxu0 %v2739_v39  ;;  %1718 = vmatprep.subr.bf16.mxu1 %v2741_v40  ;;  %v3161_v39 = vld [vmem:[#allocation21_spill] sm:$0xff] }
 0x526   :  { %v687_v40 = vadd.f32 %v3161_v39, %v2799_v2 }
 0x528   :  { %1678 = vmatpush1.bf16.msra.mxu0 %v2747_v41  ;;  %1719 = vmatpush1.bf16.msra.mxu1 %v2749_v42  ;;  %v3162_v42 = vld [vmem:[#allocation23_spill] sm:$0xff] }
 0x529   :  { %1679 = vmatprep.subr.bf16.mxu0 %v2753_v43  ;;  %1720 = vmatprep.subr.bf16.mxu1 %v2755_v44  ;;  %v689_v43 = vadd.f32 %v3162_v42, %v2806_v11 }
 0x52c   :  { %1680 = vmatpush1.bf16.msra.mxu0 %v2759_v45  ;;  %1721 = vmatpush1.bf16.msra.mxu1 %v2761_v46 }
 0x52d   :  { %1681 = vmatprep.subr.bf16.mxu0 %v2765_v47  ;;  %1722 = vmatprep.subr.bf16.mxu1 %v2767_v48 }
 0x530   :  { %1682 = vmatpush1.bf16.msra.mxu0 %v2771_v49  ;;  %1723 = vmatpush1.bf16.msra.mxu1 %v2773_v50 }
 0x531   :  { %1785 = vmatprep.subr.bf16.mxu0 %v2354_v21  ;;  %1826 = vmatprep.subr.bf16.mxu1 %v2355_v22  ;;  %v2375_v21 = vld [vmem:[#allocation6 + $0x4c] ss:$16 sps:$4 sm:$0xff]   ;;  %v2376_v22 = vld [vmem:[#allocation6 + $0x40] ss:$16 sps:$4 sm:$0xff]  }
 0x5d3   :  { %v1583_v25 = vpop.f32.mrf.mxu0  ;;  %v1624_v26 = vpop.f32.mrf.mxu1 }
 0x5d4   :  { %v1631_v29 = vadd.f32 %v1583_v25, %v646_v24  ;;  %v1633_v41 = vadd.f32 %v1624_v26, %v687_v40  ;;  %v2378_v24 = vld [vmem:[#allocation6 + $0x24] ss:$16 sps:$4 sm:$0xff]   ;;  %v2379_v25 = vld [vmem:[#allocation6 + $0x2c] ss:$16 sps:$4 sm:$0xff]   ;;  %v2380_v26 = vld [vmem:[#allocation6 + $0x20] ss:$16 sps:$4 sm:$0xff]  }
 0x5d5   :  { %v1585_v30 = vpop.f32.mrf.mxu0  ;;  %v1626_v31 = vpop.f32.mrf.mxu1 }
 0x5d6   :  { %v2097_v32 = vmul.f32 -1.442695, %v1631_v29  ;;  %v1632_v33 = vadd.f32 %v1585_v30, %v648_v28  ;;  %v2099_v44 = vmul.f32 -1.442695, %v1633_v41  ;;  %v1634_v45 = vadd.f32 %v1626_v31, %v689_v43  ;;  %v2382_v28 = vld [vmem:[#allocation6 + $0x4] ss:$16 sps:$4 sm:$0xff]  }
 0x5d7   :  { %v1587_v34 = vpop.f32.mrf.mxu0  ;;  %v1628_v35 = vpop.f32.mrf.mxu1  ;;  %v2383_v29 = vld [vmem:[#allocation6 + $0xc] ss:$16 sps:$4 sm:$0xff]   ;;  %v2384_v30 = vld [vmem:[#allocation6] ss:$16 sps:$4 sm:$0xff]   ;;  %v2385_v31 = vld [vmem:[#allocation6 + $0x8] ss:$16 sps:$4 sm:$0xff]  }
 0x5d8   :  { %2306 = vpow2.f32 %v2097_v32  ;;  %v2098_v36 = vmul.f32 -1.442695, %v1632_v33  ;;  %v3163_v32 = vld [vmem:[#allocation24_spill] sm:$0xff] }
 0x5d9   :  { %v1588_v37 = vpop.f32.mrf.mxu0  ;;  %v1629_v38 = vpop.f32.mrf.mxu1  ;;  %v736_v33 = vadd.f32 %v3163_v32, %v2790_v55  ;;  %v3168_v32 = vld [vmem:[#allocation30_spill] sm:$0xff] }
 0x5da   :  { %2308 = vpow2.f32 %v2098_v36  ;;  %v3164_v36 = vld [vmem:[#allocation26_spill] sm:$0xff] }
 0x5db   :  { %2310 = vpow2.f32 %v2099_v44  ;;  %v738_v37 = vadd.f32 %v3164_v36, %v2900_v51 }
 0x5dc   :  { %2312 = vtanh.f32 %v1634_v45 }
 0x5e5   :  { %v2307_v46 = vpop.eup %2306 }
 0x5e6   :  { %v1644_v47 = vadd.f32 1.0, %v2307_v46 }
 0x5e7   :  { %v2309_v48 = vpop.eup %2308 }
 0x5e8   :  { %2314 = vrcp.f32 %v1644_v47  ;;  %v1645_v49 = vadd.f32 1.0, %v2309_v48  ;;  %v2311_v50 = vpop.eup %2310  ;;  %v3165_v48 = vld [vmem:[#allocation25_spill] sm:$0xff] }
 0x5e9   :  { %v2313_v61 = vpop.eup %2312  ;;  %v1646_v19 = vadd.f32 1.0, %v2311_v50 }
 0x5ea   :  { %2316 = vrcp.f32 %v1645_v49  ;;  %v777_v49 = vadd.f32 %v3165_v48, %v2799_v2 }
 0x5eb   :  { %2318 = vrcp.f32 %v1646_v19 }
 0x5f5   :  { %v2315_v15 = vpop.eup %2314 }
 0x5f6   :  { %v1655_v63 = vmul.f32 %v2315_v15, %v2313_v61  ;;  %v3166_v61 = vld [vmem:[#allocation27_spill] sm:$0xff] }
 0x5f7   :  { %v2317_v60 = vpop.eup %2316  ;;  %v779_v15 = vadd.f32 %v3166_v61, %v2806_v11 }
 0x5f8   :  { %v1654_v5 = vmul.f32 %v2317_v60, %v3047_v17  ;;  %v2319_v8 = vpop.eup %2318  ;;  %v2369_v17 = vld [vmem:[#allocation6 + $0x88] ss:$16 sps:$4 sm:$0xff]  }
 0x5fa   :  { %v3091_v20 = vadd.f32 %v1655_v63, %v1654_v5 }
 0x5fc   :  { %2320 = vtanh.f32 %v3091_v20 }
 0x609   :  { %v2321_v59 = vpop.eup %2320 }
 0x60a   :  { %v1658_v7 = vmul.f32 %v2321_v59, %v2319_v8 }
 0x60c   :  { %v1666_v3 = vpack.c.bf16 %v1658_v7, %v1658_v7 }
 0x60e   :  { %1700 = vmatmul.mubr.bf16.vlgmr.msra.gmra.mxu0 %v1666_v3  ;;  %1741 = vmatmul.mubr.bf16.vlgmr.msra.gmra.mxu1 %v1666_v3 }
 0x60f   :  { %1786 = vmatpush1.bf16.msra.mxu0 %v2356_v57  ;;  %1827 = vmatpush1.bf16.msra.mxu1 %v2357_v6 }
 0x610   :  { %1787 = vmatprep.subr.bf16.mxu0 %v2358_v58  ;;  %1828 = vmatprep.subr.bf16.mxu1 %v2359_v1 }
 0x611   :  { %1817 = vmatprep.mubr.bf16.mxu0 %v3139_v18  ;;  %1858 = vmatprep.mubr.bf16.mxu1 %v3139_v18  ;;  %v2370_v18 = vld [vmem:[#allocation6 + $0x64] ss:$16 sps:$4 sm:$0xff]  }
 0x613   :  { %1788 = vmatpush1.bf16.msra.mxu0 %v2360_v0  ;;  %1829 = vmatpush1.bf16.msra.mxu1 %v2361_v56 }
 0x614   :  { %1789 = vmatprep.subr.bf16.mxu0 %v2362_v4  ;;  %1830 = vmatprep.subr.bf16.mxu1 %v2363_v14 }
 0x617   :  { %1790 = vmatpush1.bf16.msra.mxu0 %v2364_v12  ;;  %1831 = vmatpush1.bf16.msra.mxu1 %v2365_v52 }
 0x618   :  { %1791 = vmatprep.subr.bf16.mxu0 %v2366_v16  ;;  %1832 = vmatprep.subr.bf16.mxu1 %v2367_v9  ;;  %v2480_v16 = vmov 0.0   ;;  %v1910_v9 = vld [vmem:[#allocation8 + $0x78] sm:$0xff] }
 0x61b   :  { %1792 = vmatpush1.bf16.msra.mxu0 %v2368_v13  ;;  %1833 = vmatpush1.bf16.msra.mxu1 %v2369_v17  ;;  %v1909_v13 = vld [vmem:[#allocation8 + $0x70] sm:$0xff]  ;;  %v1907_v17 = vld [vmem:[#allocation8 + $0x60] sm:$0xff] }
 0x61c   :  { %1793 = vmatprep.subr.bf16.mxu0 %v2370_v18  ;;  %1834 = vmatprep.subr.bf16.mxu1 %v2371_v62  ;;  %v1906_v18 = vld [vmem:[#allocation8 + $0x58] sm:$0xff]  ;;  %v1905_v62 = vld [vmem:[#allocation8 + $0x50] sm:$0xff] }
 0x61f   :  { %1794 = vmatpush1.bf16.msra.mxu0 %v2372_v53  ;;  %1835 = vmatpush1.bf16.msra.mxu1 %v2373_v10  ;;  %v1904_v53 = vld [vmem:[#allocation8 + $0x48] sm:$0xff]  ;;  %v1903_v10 = vld [vmem:[#allocation8 + $0x40] sm:$0xff] }
 0x620   :  { %1795 = vmatprep.subr.bf16.mxu0 %v2374_v54  ;;  %1836 = vmatprep.subr.bf16.mxu1 %v2375_v21  ;;  %v1902_v54 = vld [vmem:[#allocation8 + $0x38] sm:$0xff]  ;;  %v1901_v21 = vld [vmem:[#allocation8 + $0x30] sm:$0xff] }
 0x623   :  { %1796 = vmatpush1.bf16.msra.mxu0 %v2376_v22  ;;  %1837 = vmatpush1.bf16.msra.mxu1 %v2377_v23  ;;  %v1900_v22 = vld [vmem:[#allocation8 + $0x28] sm:$0xff]  ;;  %v1899_v23 = vld [vmem:[#allocation8 + $0x20] sm:$0xff] }
 0x624   :  { %1797 = vmatprep.subr.bf16.mxu0 %v2378_v24  ;;  %1838 = vmatprep.subr.bf16.mxu1 %v2379_v25  ;;  %v1898_v24 = vld [vmem:[#allocation8 + $0x18] sm:$0xff]  ;;  %v1897_v25 = vld [vmem:[#allocation8 + $0x10] sm:$0xff] }
 0x627   :  { %1798 = vmatpush1.bf16.msra.mxu0 %v2380_v26  ;;  %1839 = vmatpush1.bf16.msra.mxu1 %v2381_v27  ;;  %v1896_v26 = vld [vmem:[#allocation8 + $0x8] sm:$0xff]  ;;  %v1895_v27 = vld [vmem:[#allocation8] sm:$0xff] }
 0x628   :  { %1799 = vmatprep.subr.bf16.mxu0 %v2382_v28  ;;  %1840 = vmatprep.subr.bf16.mxu1 %v2383_v29  ;;  %v3167_v28 = vld [vmem:[#allocation28_spill] sm:$0xff] }
 0x629   :  { %v826_v29 = vadd.f32 %v3167_v28, %v2790_v55 }
 0x62b   :  { %1800 = vmatpush1.bf16.msra.mxu0 %v2384_v30  ;;  %1841 = vmatpush1.bf16.msra.mxu1 %v2385_v31 }
 0x62c   :  { %2124 = vmatprep.subr.mxu0 %v2480_v16 }
 0x6ce   :  { %v1701_v34 = vpop.f32.mrf.mxu0  ;;  %v1742_v35 = vpop.f32.mrf.mxu1 }
 0x6cf   :  { %v1749_v38 = vadd.f32 %v1701_v34, %v736_v33  ;;  %v1751_v50 = vadd.f32 %v1742_v35, %v777_v49  ;;  %v828_v33 = vadd.f32 %v3168_v32, %v2900_v51 }
 0x6d0   :  { %v1703_v39 = vpop.f32.mrf.mxu0  ;;  %v1744_v40 = vpop.f32.mrf.mxu1 }
 0x6d1   :  { %v2100_v41 = vmul.f32 -1.442695, %v1749_v38  ;;  %v1750_v42 = vadd.f32 %v1703_v39, %v738_v37  ;;  %v2102_v63 = vmul.f32 -1.442695, %v1751_v50  ;;  %v1752_v60 = vadd.f32 %v1744_v40, %v779_v15 }
 0x6d2   :  { %v1705_v43 = vpop.f32.mrf.mxu0  ;;  %v1746_v44 = vpop.f32.mrf.mxu1 }
 0x6d3   :  { %2322 = vpow2.f32 %v2100_v41  ;;  %v2101_v45 = vmul.f32 -1.442695, %v1750_v42  ;;  %v3169_v44 = vld [vmem:[#allocation29_spill] sm:$0xff] }
 0x6d4   :  { %v1706_v46 = vpop.f32.mrf.mxu0  ;;  %v1747_v47 = vpop.f32.mrf.mxu1  ;;  %v867_v55 = vadd.f32 %v3169_v44, %v2799_v2 }
 0x6d5   :  { %2324 = vpow2.f32 %v2101_v45  ;;  %v3170_v46 = vld [vmem:[#allocation31_spill] sm:$0xff] }
 0x6d6   :  { %2326 = vpow2.f32 %v2102_v63  ;;  %v869_v47 = vadd.f32 %v3170_v46, %v2806_v11 }
 0x6d7   :  { %2328 = vtanh.f32 %v1752_v60 }
 0x6e0   :  { %v2323_v19 = vpop.eup %2322 }
 0x6e1   :  { %v1762_v5 = vadd.f32 1.0, %v2323_v19 }
 0x6e2   :  { %v2325_v8 = vpop.eup %2324 }
 0x6e3   :  { %2330 = vrcp.f32 %v1762_v5  ;;  %v1763_v59 = vadd.f32 1.0, %v2325_v8  ;;  %v2327_v7 = vpop.eup %2326 }
 0x6e4   :  { %v2329_v3 = vpop.eup %2328  ;;  %v1764_v1 = vadd.f32 1.0, %v2327_v7 }
 0x6e5   :  { %2332 = vrcp.f32 %v1763_v59 }
 0x6e6   :  { %2334 = vrcp.f32 %v1764_v1 }
 0x6f0   :  { %v2331_v57 = vpop.eup %2330 }
 0x6f1   :  { %v1773_v6 = vmul.f32 %v2331_v57, %v2329_v3 }
 0x6f2   :  { %v2333_v58 = vpop.eup %2332 }
 0x6f3   :  { %v1772_v0 = vmul.f32 %v2333_v58, %v3091_v20  ;;  %v2335_v4 = vpop.eup %2334  ;;  %v1908_v20 = vld [vmem:[#allocation8 + $0x68] sm:$0xff] }
 0x6f5   :  { %v3105_v56 = vadd.f32 %v1773_v6, %v1772_v0  ;;  %v2106_v6 = vld [vmem:[%s3128_s5] ss:$0 sm:$0xff] }
 0x6f7   :  { %2336 = vtanh.f32 %v3105_v56 }
 0x704   :  { %v2337_v14 = vpop.eup %2336 }
 0x705   :  { %v1776_v12 = vmul.f32 %v2337_v14, %v2335_v4 }
 0x707   :  { %v1784_v52 = vpack.c.bf16 %v1776_v12, %v1776_v12 }
 0x709   :  { %1818 = vmatmul.mubr.bf16.vlgmr.msra.gmra.mxu0 %v1784_v52  ;;  %1859 = vmatmul.mubr.bf16.vlgmr.msra.gmra.mxu1 %v1784_v52 }
 0x70a   :  { %2125 = vmatpush3.msra.mxu0 %v1910_v9  ;;  %2156 = vmatprep.mubr.msk.f32.mxu0 %vm2481_vm2, %v2480_v16 }
 0x70b   :  { %2126 = vmatprep.subr.mxu0 %v2480_v16 }
 0x70c   :  { %2127 = vmatpush3.msra.mxu0 %v1909_v13 }
 0x70d   :  { %2128 = vmatprep.subr.mxu0 %v2480_v16 }
 0x70e   :  { %2129 = vmatpush3.msra.mxu0 %v1908_v20 }
 0x70f   :  { %2130 = vmatprep.subr.mxu0 %v2480_v16 }
 0x710   :  { %2131 = vmatpush3.msra.mxu0 %v1907_v17 }
 0x711   :  { %2132 = vmatprep.subr.mxu0 %v2480_v16 }
 0x712   :  { %2133 = vmatpush3.msra.mxu0 %v1906_v18 }
 0x713   :  { %2134 = vmatprep.subr.mxu0 %v2480_v16 }
 0x714   :  { %2135 = vmatpush3.msra.mxu0 %v1905_v62 }
 0x715   :  { %2136 = vmatprep.subr.mxu0 %v2480_v16 }
 0x716   :  { %2137 = vmatpush3.msra.mxu0 %v1904_v53 }
 0x717   :  { %2138 = vmatprep.subr.mxu0 %v2480_v16 }
 0x718   :  { %2139 = vmatpush3.msra.mxu0 %v1903_v10 }
 0x719   :  { %2140 = vmatprep.subr.mxu0 %v2480_v16 }
 0x71a   :  { %2141 = vmatpush3.msra.mxu0 %v1902_v54 }
 0x71b   :  { %2142 = vmatprep.subr.mxu0 %v2480_v16 }
 0x71c   :  { %2143 = vmatpush3.msra.mxu0 %v1901_v21 }
 0x71d   :  { %2144 = vmatprep.subr.mxu0 %v2480_v16 }
 0x71e   :  { %2145 = vmatpush3.msra.mxu0 %v1900_v22 }
 0x71f   :  { %2146 = vmatprep.subr.mxu0 %v2480_v16 }
 0x720   :  { %2147 = vmatpush3.msra.mxu0 %v1899_v23 }
 0x721   :  { %2148 = vmatprep.subr.mxu0 %v2480_v16 }
 0x722   :  { %2149 = vmatpush3.msra.mxu0 %v1898_v24 }
 0x723   :  { %2150 = vmatprep.subr.mxu0 %v2480_v16 }
 0x724   :  { %2151 = vmatpush3.msra.mxu0 %v1897_v25 }
 0x725   :  { %2152 = vmatprep.subr.mxu0 %v2480_v16 }
 0x726   :  { %2153 = vmatpush3.msra.mxu0 %v1896_v26 }
 0x727   :  { %2154 = vmatprep.subr.mxu0 %v2480_v16 }
 0x728   :  { %2155 = vmatpush3.msra.mxu0 %v1895_v27 }
 0x7c9   :  { %v1819_v30 = vpop.f32.mrf.mxu0  ;;  %v1860_v31 = vpop.f32.mrf.mxu1 }
 0x7ca   :  { %v1867_v34 = vadd.f32 %v1819_v30, %v826_v29  ;;  %v1869_v45 = vadd.f32 %v1860_v31, %v867_v55 }
 0x7cb   :  { %v1821_v35 = vpop.f32.mrf.mxu0  ;;  %v1862_v36 = vpop.f32.mrf.mxu1 }
 0x7cc   :  { %v2103_v37 = vmul.f32 -1.442695, %v1867_v34  ;;  %v1868_v38 = vadd.f32 %v1821_v35, %v828_v33  ;;  %v2105_v51 = vmul.f32 -1.442695, %v1869_v45  ;;  %v1870_v48 = vadd.f32 %v1862_v36, %v869_v47 }
 0x7cd   :  { %v1823_v39 = vpop.f32.mrf.mxu0  ;;  %v1864_v40 = vpop.f32.mrf.mxu1 }
 0x7ce   :  { %2338 = vpow2.f32 %v2103_v37  ;;  %v2104_v41 = vmul.f32 -1.442695, %v1868_v38 }
 0x7cf   :  { %v1824_v42 = vpop.f32.mrf.mxu0  ;;  %v1865_v43 = vpop.f32.mrf.mxu1 }
 0x7d0   :  { %2340 = vpow2.f32 %v2104_v41 }
 0x7d1   :  { %2342 = vpow2.f32 %v2105_v51 }
 0x7d2   :  { %2344 = vtanh.f32 %v1870_v48 }
 0x7db   :  { %v2339_v49 = vpop.eup %2338 }
 0x7dc   :  { %v1880_v50 = vadd.f32 1.0, %v2339_v49 }
 0x7dd   :  { %v2341_v61 = vpop.eup %2340 }
 0x7de   :  { %2346 = vrcp.f32 %v1880_v50  ;;  %v1881_v15 = vadd.f32 1.0, %v2341_v61  ;;  %v2343_v63 = vpop.eup %2342 }
 0x7df   :  { %v2345_v60 = vpop.eup %2344  ;;  %v1882_v2 = vadd.f32 1.0, %v2343_v63 }
 0x7e0   :  { %2348 = vrcp.f32 %v1881_v15 }
 0x7e1   :  { %2350 = vrcp.f32 %v1882_v2 }
 0x7eb   :  { %v2347_v19 = vpop.eup %2346 }
 0x7ec   :  { %v1891_v5 = vmul.f32 %v2347_v19, %v2345_v60 }
 0x7ed   :  { %v2349_v8 = vpop.eup %2348 }
 0x7ee   :  { %v1890_v59 = vmul.f32 %v2349_v8, %v3105_v56  ;;  %v2351_v11 = vpop.eup %2350 }
 0x7f0   :  { %v1892_v7 = vadd.f32 %v1891_v5, %v1890_v59 }
 0x7f2   :  { %2352 = vtanh.f32 %v1892_v7 }
 0x7ff   :  { %v2353_v3 = vpop.eup %2352 }
 0x800   :  { %v1894_v57 = vmul.f32 %v2353_v3, %v2351_v11 }
 0x802   :  { %2157 = vmatmul.mubr.f32.vlgmr.msra.gmra.mxu0 %v1894_v57 }
 0x8c2   :  { %v1984_v58 = vpop.f32.mrf.mxu0 }
 0x8c3   :  { %v1985_v1 = vadd.f32 %v2106_v6, %v1984_v58 }
 0x8c4   :  { %v2158_v0 = vpop.f32.mrf.mxu0 }
 0x8c5   :  { %1988 = vst [vmem:[#allocation9] sm:$0xff] %v1985_v1 }
 0x8c6   :  { %2457 = shalt.err (!%p2454_p5)
}
 0x8c7   :  { %1998 = dma.vmem_to_hbm [thread:$0]  %s1996_s8, 128, %s3129_s6, [#allocation5]  }
 0x8c8   :  { %2470 = dma.done.wait [#allocation5], 128  }
 0x8c9   :  { %2471 = vsyncadd [#allocation5], 4294967168 }
 0x8ca   :  { %2002 = vsyncpa [#allocation4], 1 }
 0x8cb   :  { %2003 = vsyncpa [#allocation7], 1 }
 0x8cc   :  { %2004 = vsyncpa [#allocation5], 1 }

</bundles_post_ra>
